<compile_context>
chip_gen: v6e
topology: v6e:2x2x1
jax: 0.10.0
libtpu: 0.0.40
codegen_flags: <defaults>
</compile_context>

<pallas_src>
import jax
import jax.numpy as jnp
from jax.experimental import pallas as pl
from jax.experimental.pallas import tpu as pltpu


def _round_up(x, m):
    return (x + m - 1) // m * m


def _make_adder_bn_relu_kernel(FB):
    """adder2d + folded BatchNorm + ReLU for one (TM x FB) output block."""

    def kernel(x_ref, w_ref, scale_ref, shift_ref, o_ref):
        # x_ref:     (TM, D)     im2col patches for TM output positions
        # w_ref:     (FB, D)     FB flattened adder filters
        # scale_ref: (1, 1, FB)  folded  -gamma / sqrt(var + eps)
        # shift_ref: (1, 1, FB)  folded  beta - mean * gamma / sqrt(var + eps)
        # o_ref:     (1, TM, FB)
        cols = []
        for j in range(FB):                                   # static unroll
            wrow = w_ref[j:j + 1, :]                          # (1, D) static sublane slice
            diff = jnp.abs(x_ref[...] - wrow)                 # (TM, D) on the VPU
            cols.append(jnp.sum(diff, axis=1, keepdims=True)) # (TM, 1)
        acc = jnp.concatenate(cols, axis=1)[None]             # (1, TM, FB) static placement
        y = acc * scale_ref[...] + shift_ref[...]             # adder negation + BN folded
        o_ref[...] = jnp.maximum(y, 0.0)                      # ReLU

    return kernel


def _adder_bn_relu_nhwc(x, w, gamma, beta, mean, var):
    """adder2d(kernel=3, stride=1, pad=1, bias=False) + BatchNorm2d(eval) + ReLU, NHWC."""
    eps = 1e-5
    N, H, W, C = x.shape
    F = w.shape[0]
    D = 9 * C
    M = N * H * W

    # im2col in NHWC ordering (d = (kh*3 + kw)*C + c); weights flattened to match.
    # TODO(synk): patches are materialized in HBM (9x the input); folding im2col into
    # the kernel (overlapping windows / manual DMA) would remove this at large N/H/W.
    xp = jnp.pad(x, ((0, 0), (1, 1), (1, 1), (0, 0)))
    patches = jnp.stack(
        [xp[:, i:i + H, j:j + W, :] for i in range(3) for j in range(3)], axis=3)
    patches = patches.reshape(M, D).astype(jnp.float32)
    w_flat = w.transpose(0, 2, 3, 1).reshape(F, D).astype(jnp.float32)
    # TODO(synk): bf16 compute (v6e/v7x VPU) skipped to keep f32 parity with PyTorch.

    # Per-layer tiling: TM sized to the real number of output rows, FB filters per step.
    TM = min(128, _round_up(M, 8))
    Mp = _round_up(M, TM)
    if TM <= 64 and F % 32 == 0:
        FB = 32
    elif F % 16 == 0:
        FB = 16
    elif F % 8 == 0:
        FB = 8
    else:
        FB = F
    n_m, n_f = Mp // TM, F // FB

    if Mp != M:
        patches = jnp.pad(patches, ((0, Mp - M), (0, 0)))

    # Fold adder negation + BatchNorm (eval mode, running stats) into one scale/shift.
    # TODO(synk): PyTorch train-mode BN would use batch statistics instead.
    inv = (gamma / jnp.sqrt(var + eps)).astype(jnp.float32)
    neg_scale = (-inv).reshape(n_f, 1, FB)
    shift = (beta.astype(jnp.float32)
             - mean.astype(jnp.float32) * inv).reshape(n_f, 1, FB)

    out = pl.pallas_call(
        _make_adder_bn_relu_kernel(FB),
        out_shape=jax.ShapeDtypeStruct((n_f, Mp, FB), jnp.float32),
        grid_spec=pltpu.PrefetchScalarGridSpec(
            num_scalar_prefetch=0,
            grid=(n_m, n_f),   # filter axis innermost -> x tile reused, not re-DMA'd
            in_specs=[
                pl.BlockSpec((TM, D), lambda m, fb: (m, 0)),
                pl.BlockSpec((FB, D), lambda m, fb: (fb, 0)),
                pl.BlockSpec((1, 1, FB), lambda m, fb: (fb, 0, 0)),
                pl.BlockSpec((1, 1, FB), lambda m, fb: (fb, 0, 0)),
            ],
            out_specs=pl.BlockSpec((1, TM, FB), lambda m, fb: (fb, m, 0)),
        ),
        compiler_params=pltpu.CompilerParams(
            dimension_semantics=("parallel", "parallel")),
    )(patches, w_flat, neg_scale, shift)

    out = out.transpose(1, 0, 2).reshape(Mp, F)[:M]
    return out.reshape(N, H, W, F)


# jit so identical layer shapes (the three trailing 128->128 blocks) share one compile.
adder_bn_relu_nhwc = jax.jit(_adder_bn_relu_nhwc)


def maxpool2x2_nhwc(x):
    # nn.MaxPool2d(2, 2, return_indices=True): only the pooled values are used.
    # TODO(synk): pooling indices (pool_locs) are not materialized; the PyTorch
    # forward only stashes them on the module and returns the pooled values.
    N, H, W, C = x.shape
    return x.reshape(N, H // 2, 2, W // 2, 2, C).max(axis=(2, 4))


# (cin, cout) per adder block, 'M' = maxpool — mirrors self.feature
_CFG = [(3, 32), (32, 32), 'M',
        (32, 64), (64, 64), 'M',
        (64, 128), (128, 128), (128, 128), (128, 128), 'M']


def init_params(key):
    # Deterministic synthetic parameters (the original loads a .pt checkpoint).
    params = []
    for item in _CFG:
        if item == 'M':
            params.append('M')
            continue
        cin, cout = item
        key, k1, k2, k3, k4, k5 = jax.random.split(key, 6)
        w = jax.random.normal(k1, (cout, cin, 3, 3), jnp.float32) * 0.1
        gamma = jax.random.uniform(k2, (cout,), jnp.float32, 0.5, 1.5)
        beta = jax.random.normal(k3, (cout,), jnp.float32) * 0.1
        # running_mean roughly centered on the expected adder output scale so the
        # synthetic net does not saturate to all-zeros after ReLU.
        mean = -0.5 * cin * 9 + jax.random.normal(k4, (cout,), jnp.float32)
        var = jax.random.uniform(k5, (cout,), jnp.float32, 0.5, 1.5) * (cin * 9.0)
        params.append((w, gamma, beta, mean, var))
    return params


def forward(x_nchw, params):
    # Reproduces AdderConv_new.forward: runs self.feature only (classifier unused).
    x = jnp.transpose(x_nchw, (0, 2, 3, 1))          # NCHW -> NHWC once
    for p in params:
        if isinstance(p, str) and p == 'M':
            x = maxpool2x2_nhwc(x)
        else:
            w, gamma, beta, mean, var = p
            x = adder_bn_relu_nhwc(x, w, gamma, beta, mean, var)
    return jnp.transpose(x, (0, 3, 1, 2))            # back to NCHW like PyTorch


if __name__ == "__main__":
    key = jax.random.PRNGKey(0)
    kx, kp = jax.random.split(key)
    # NCHW input like PyTorch; 3 channels, 16x16 spatial (divisible by 8 for 3 pools)
    x = jax.random.normal(kx, (2, 3, 16, 16), jnp.float32)
    params = init_params(kp)
    out = forward(x, params)
    out = jax.block_until_ready(out)
    assert out.shape == (2, 128, 2, 2), out.shape
    assert bool(jnp.all(jnp.isfinite(out)))
    print("KERNEL_OK")
</pallas_src>

<mosaic_0001>
module attributes {stable_mosaic.version = 11 : i64} {
  func.func @kernel(%arg0: i32, %arg1: i32, %arg2: memref<128x27xf32, #tpu.memory_space<vmem>>, %arg3: memref<16x27xf32, #tpu.memory_space<vmem>>, %arg4: memref<1x1x16xf32, #tpu.memory_space<vmem>>, %arg5: memref<1x1x16xf32, #tpu.memory_space<vmem>>, %arg6: memref<1x128x16xf32, #tpu.memory_space<vmem>>) attributes {dimension_semantics = [#tpu.dimension_semantics<parallel>, #tpu.dimension_semantics<parallel>], iteration_bounds = array<i64: 4, 2>, scalar_prefetch = 0 : i64, scratch_operands = 0 : i64, tpu.core_type = #tpu.core_type<tc>, window_params = [{transform_indices = @transform_0, window_bounds = array<i64: 128, 27>}, {transform_indices = @transform_1, window_bounds = array<i64: 16, 27>}, {transform_indices = @transform_2, window_bounds = array<i64: 1, 1, 16>}, {transform_indices = @transform_3, window_bounds = array<i64: 1, 1, 16>}, {transform_indices = @transform_4, window_bounds = array<i64: 1, 128, 16>}]} {
    %c0 = arith.constant 0 : index
    %c0_0 = arith.constant 0 : index
    %0 = vector.load %arg3[%c0, %c0_0] : memref<16x27xf32, #tpu.memory_space<vmem>>, vector<1x27xf32>
    %c0_1 = arith.constant 0 : index
    %c0_2 = arith.constant 0 : index
    %1 = vector.load %arg2[%c0_1, %c0_2] : memref<128x27xf32, #tpu.memory_space<vmem>>, vector<128x27xf32>
    %2 = vector.broadcast %0 : vector<1x27xf32> to vector<128x27xf32>
    %3 = arith.subf %1, %2 : vector<128x27xf32>
    %4 = math.absf %3 : vector<128x27xf32>
    %cst = arith.constant dense<0.000000e+00> : vector<128xf32>
    %5 = vector.multi_reduction <add>, %4, %cst [1] : vector<128x27xf32> to vector<128xf32>
    %6 = vector.shape_cast %5 : vector<128xf32> to vector<128x1xf32>
    %c1 = arith.constant 1 : index
    %c0_3 = arith.constant 0 : index
    %7 = vector.load %arg3[%c1, %c0_3] : memref<16x27xf32, #tpu.memory_space<vmem>>, vector<1x27xf32>
    %c0_4 = arith.constant 0 : index
    %c0_5 = arith.constant 0 : index
    %8 = vector.load %arg2[%c0_4, %c0_5] : memref<128x27xf32, #tpu.memory_space<vmem>>, vector<128x27xf32>
    %9 = vector.broadcast %7 : vector<1x27xf32> to vector<128x27xf32>
    %10 = arith.subf %8, %9 : vector<128x27xf32>
    %11 = math.absf %10 : vector<128x27xf32>
    %cst_6 = arith.constant dense<0.000000e+00> : vector<128xf32>
    %12 = vector.multi_reduction <add>, %11, %cst_6 [1] : vector<128x27xf32> to vector<128xf32>
    %13 = vector.shape_cast %12 : vector<128xf32> to vector<128x1xf32>
    %c2 = arith.constant 2 : index
    %c0_7 = arith.constant 0 : index
    %14 = vector.load %arg3[%c2, %c0_7] : memref<16x27xf32, #tpu.memory_space<vmem>>, vector<1x27xf32>
    %c0_8 = arith.constant 0 : index
    %c0_9 = arith.constant 0 : index
    %15 = vector.load %arg2[%c0_8, %c0_9] : memref<128x27xf32, #tpu.memory_space<vmem>>, vector<128x27xf32>
    %16 = vector.broadcast %14 : vector<1x27xf32> to vector<128x27xf32>
    %17 = arith.subf %15, %16 : vector<128x27xf32>
    %18 = math.absf %17 : vector<128x27xf32>
    %cst_10 = arith.constant dense<0.000000e+00> : vector<128xf32>
    %19 = vector.multi_reduction <add>, %18, %cst_10 [1] : vector<128x27xf32> to vector<128xf32>
    %20 = vector.shape_cast %19 : vector<128xf32> to vector<128x1xf32>
    %c3 = arith.constant 3 : index
    %c0_11 = arith.constant 0 : index
    %21 = vector.load %arg3[%c3, %c0_11] : memref<16x27xf32, #tpu.memory_space<vmem>>, vector<1x27xf32>
    %c0_12 = arith.constant 0 : index
    %c0_13 = arith.constant 0 : index
    %22 = vector.load %arg2[%c0_12, %c0_13] : memref<128x27xf32, #tpu.memory_space<vmem>>, vector<128x27xf32>
    %23 = vector.broadcast %21 : vector<1x27xf32> to vector<128x27xf32>
    %24 = arith.subf %22, %23 : vector<128x27xf32>
    %25 = math.absf %24 : vector<128x27xf32>
    %cst_14 = arith.constant dense<0.000000e+00> : vector<128xf32>
    %26 = vector.multi_reduction <add>, %25, %cst_14 [1] : vector<128x27xf32> to vector<128xf32>
    %27 = vector.shape_cast %26 : vector<128xf32> to vector<128x1xf32>
    %c4 = arith.constant 4 : index
    %c0_15 = arith.constant 0 : index
    %28 = vector.load %arg3[%c4, %c0_15] : memref<16x27xf32, #tpu.memory_space<vmem>>, vector<1x27xf32>
    %c0_16 = arith.constant 0 : index
    %c0_17 = arith.constant 0 : index
    %29 = vector.load %arg2[%c0_16, %c0_17] : memref<128x27xf32, #tpu.memory_space<vmem>>, vector<128x27xf32>
    %30 = vector.broadcast %28 : vector<1x27xf32> to vector<128x27xf32>
    %31 = arith.subf %29, %30 : vector<128x27xf32>
    %32 = math.absf %31 : vector<128x27xf32>
    %cst_18 = arith.constant dense<0.000000e+00> : vector<128xf32>
    %33 = vector.multi_reduction <add>, %32, %cst_18 [1] : vector<128x27xf32> to vector<128xf32>
    %34 = vector.shape_cast %33 : vector<128xf32> to vector<128x1xf32>
    %c5 = arith.constant 5 : index
    %c0_19 = arith.constant 0 : index
    %35 = vector.load %arg3[%c5, %c0_19] : memref<16x27xf32, #tpu.memory_space<vmem>>, vector<1x27xf32>
    %c0_20 = arith.constant 0 : index
    %c0_21 = arith.constant 0 : index
    %36 = vector.load %arg2[%c0_20, %c0_21] : memref<128x27xf32, #tpu.memory_space<vmem>>, vector<128x27xf32>
    %37 = vector.broadcast %35 : vector<1x27xf32> to vector<128x27xf32>
    %38 = arith.subf %36, %37 : vector<128x27xf32>
    %39 = math.absf %38 : vector<128x27xf32>
    %cst_22 = arith.constant dense<0.000000e+00> : vector<128xf32>
    %40 = vector.multi_reduction <add>, %39, %cst_22 [1] : vector<128x27xf32> to vector<128xf32>
    %41 = vector.shape_cast %40 : vector<128xf32> to vector<128x1xf32>
    %c6 = arith.constant 6 : index
    %c0_23 = arith.constant 0 : index
    %42 = vector.load %arg3[%c6, %c0_23] : memref<16x27xf32, #tpu.memory_space<vmem>>, vector<1x27xf32>
    %c0_24 = arith.constant 0 : index
    %c0_25 = arith.constant 0 : index
    %43 = vector.load %arg2[%c0_24, %c0_25] : memref<128x27xf32, #tpu.memory_space<vmem>>, vector<128x27xf32>
    %44 = vector.broadcast %42 : vector<1x27xf32> to vector<128x27xf32>
    %45 = arith.subf %43, %44 : vector<128x27xf32>
    %46 = math.absf %45 : vector<128x27xf32>
    %cst_26 = arith.constant dense<0.000000e+00> : vector<128xf32>
    %47 = vector.multi_reduction <add>, %46, %cst_26 [1] : vector<128x27xf32> to vector<128xf32>
    %48 = vector.shape_cast %47 : vector<128xf32> to vector<128x1xf32>
    %c7 = arith.constant 7 : index
    %c0_27 = arith.constant 0 : index
    %49 = vector.load %arg3[%c7, %c0_27] : memref<16x27xf32, #tpu.memory_space<vmem>>, vector<1x27xf32>
    %c0_28 = arith.constant 0 : index
    %c0_29 = arith.constant 0 : index
    %50 = vector.load %arg2[%c0_28, %c0_29] : memref<128x27xf32, #tpu.memory_space<vmem>>, vector<128x27xf32>
    %51 = vector.broadcast %49 : vector<1x27xf32> to vector<128x27xf32>
    %52 = arith.subf %50, %51 : vector<128x27xf32>
    %53 = math.absf %52 : vector<128x27xf32>
    %cst_30 = arith.constant dense<0.000000e+00> : vector<128xf32>
    %54 = vector.multi_reduction <add>, %53, %cst_30 [1] : vector<128x27xf32> to vector<128xf32>
    %55 = vector.shape_cast %54 : vector<128xf32> to vector<128x1xf32>
    %c8 = arith.constant 8 : index
    %c0_31 = arith.constant 0 : index
    %56 = vector.load %arg3[%c8, %c0_31] : memref<16x27xf32, #tpu.memory_space<vmem>>, vector<1x27xf32>
    %c0_32 = arith.constant 0 : index
    %c0_33 = arith.constant 0 : index
    %57 = vector.load %arg2[%c0_32, %c0_33] : memref<128x27xf32, #tpu.memory_space<vmem>>, vector<128x27xf32>
    %58 = vector.broadcast %56 : vector<1x27xf32> to vector<128x27xf32>
    %59 = arith.subf %57, %58 : vector<128x27xf32>
    %60 = math.absf %59 : vector<128x27xf32>
    %cst_34 = arith.constant dense<0.000000e+00> : vector<128xf32>
    %61 = vector.multi_reduction <add>, %60, %cst_34 [1] : vector<128x27xf32> to vector<128xf32>
    %62 = vector.shape_cast %61 : vector<128xf32> to vector<128x1xf32>
    %c9 = arith.constant 9 : index
    %c0_35 = arith.constant 0 : index
    %63 = vector.load %arg3[%c9, %c0_35] : memref<16x27xf32, #tpu.memory_space<vmem>>, vector<1x27xf32>
    %c0_36 = arith.constant 0 : index
    %c0_37 = arith.constant 0 : index
    %64 = vector.load %arg2[%c0_36, %c0_37] : memref<128x27xf32, #tpu.memory_space<vmem>>, vector<128x27xf32>
    %65 = vector.broadcast %63 : vector<1x27xf32> to vector<128x27xf32>
    %66 = arith.subf %64, %65 : vector<128x27xf32>
    %67 = math.absf %66 : vector<128x27xf32>
    %cst_38 = arith.constant dense<0.000000e+00> : vector<128xf32>
    %68 = vector.multi_reduction <add>, %67, %cst_38 [1] : vector<128x27xf32> to vector<128xf32>
    %69 = vector.shape_cast %68 : vector<128xf32> to vector<128x1xf32>
    %c10 = arith.constant 10 : index
    %c0_39 = arith.constant 0 : index
    %70 = vector.load %arg3[%c10, %c0_39] : memref<16x27xf32, #tpu.memory_space<vmem>>, vector<1x27xf32>
    %c0_40 = arith.constant 0 : index
    %c0_41 = arith.constant 0 : index
    %71 = vector.load %arg2[%c0_40, %c0_41] : memref<128x27xf32, #tpu.memory_space<vmem>>, vector<128x27xf32>
    %72 = vector.broadcast %70 : vector<1x27xf32> to vector<128x27xf32>
    %73 = arith.subf %71, %72 : vector<128x27xf32>
    %74 = math.absf %73 : vector<128x27xf32>
    %cst_42 = arith.constant dense<0.000000e+00> : vector<128xf32>
    %75 = vector.multi_reduction <add>, %74, %cst_42 [1] : vector<128x27xf32> to vector<128xf32>
    %76 = vector.shape_cast %75 : vector<128xf32> to vector<128x1xf32>
    %c11 = arith.constant 11 : index
    %c0_43 = arith.constant 0 : index
    %77 = vector.load %arg3[%c11, %c0_43] : memref<16x27xf32, #tpu.memory_space<vmem>>, vector<1x27xf32>
    %c0_44 = arith.constant 0 : index
    %c0_45 = arith.constant 0 : index
    %78 = vector.load %arg2[%c0_44, %c0_45] : memref<128x27xf32, #tpu.memory_space<vmem>>, vector<128x27xf32>
    %79 = vector.broadcast %77 : vector<1x27xf32> to vector<128x27xf32>
    %80 = arith.subf %78, %79 : vector<128x27xf32>
    %81 = math.absf %80 : vector<128x27xf32>
    %cst_46 = arith.constant dense<0.000000e+00> : vector<128xf32>
    %82 = vector.multi_reduction <add>, %81, %cst_46 [1] : vector<128x27xf32> to vector<128xf32>
    %83 = vector.shape_cast %82 : vector<128xf32> to vector<128x1xf32>
    %c12 = arith.constant 12 : index
    %c0_47 = arith.constant 0 : index
    %84 = vector.load %arg3[%c12, %c0_47] : memref<16x27xf32, #tpu.memory_space<vmem>>, vector<1x27xf32>
    %c0_48 = arith.constant 0 : index
    %c0_49 = arith.constant 0 : index
    %85 = vector.load %arg2[%c0_48, %c0_49] : memref<128x27xf32, #tpu.memory_space<vmem>>, vector<128x27xf32>
    %86 = vector.broadcast %84 : vector<1x27xf32> to vector<128x27xf32>
    %87 = arith.subf %85, %86 : vector<128x27xf32>
    %88 = math.absf %87 : vector<128x27xf32>
    %cst_50 = arith.constant dense<0.000000e+00> : vector<128xf32>
    %89 = vector.multi_reduction <add>, %88, %cst_50 [1] : vector<128x27xf32> to vector<128xf32>
    %90 = vector.shape_cast %89 : vector<128xf32> to vector<128x1xf32>
    %c13 = arith.constant 13 : index
    %c0_51 = arith.constant 0 : index
    %91 = vector.load %arg3[%c13, %c0_51] : memref<16x27xf32, #tpu.memory_space<vmem>>, vector<1x27xf32>
    %c0_52 = arith.constant 0 : index
    %c0_53 = arith.constant 0 : index
    %92 = vector.load %arg2[%c0_52, %c0_53] : memref<128x27xf32, #tpu.memory_space<vmem>>, vector<128x27xf32>
    %93 = vector.broadcast %91 : vector<1x27xf32> to vector<128x27xf32>
    %94 = arith.subf %92, %93 : vector<128x27xf32>
    %95 = math.absf %94 : vector<128x27xf32>
    %cst_54 = arith.constant dense<0.000000e+00> : vector<128xf32>
    %96 = vector.multi_reduction <add>, %95, %cst_54 [1] : vector<128x27xf32> to vector<128xf32>
    %97 = vector.shape_cast %96 : vector<128xf32> to vector<128x1xf32>
    %c14 = arith.constant 14 : index
    %c0_55 = arith.constant 0 : index
    %98 = vector.load %arg3[%c14, %c0_55] : memref<16x27xf32, #tpu.memory_space<vmem>>, vector<1x27xf32>
    %c0_56 = arith.constant 0 : index
    %c0_57 = arith.constant 0 : index
    %99 = vector.load %arg2[%c0_56, %c0_57] : memref<128x27xf32, #tpu.memory_space<vmem>>, vector<128x27xf32>
    %100 = vector.broadcast %98 : vector<1x27xf32> to vector<128x27xf32>
    %101 = arith.subf %99, %100 : vector<128x27xf32>
    %102 = math.absf %101 : vector<128x27xf32>
    %cst_58 = arith.constant dense<0.000000e+00> : vector<128xf32>
    %103 = vector.multi_reduction <add>, %102, %cst_58 [1] : vector<128x27xf32> to vector<128xf32>
    %104 = vector.shape_cast %103 : vector<128xf32> to vector<128x1xf32>
    %c15 = arith.constant 15 : index
    %c0_59 = arith.constant 0 : index
    %105 = vector.load %arg3[%c15, %c0_59] : memref<16x27xf32, #tpu.memory_space<vmem>>, vector<1x27xf32>
    %c0_60 = arith.constant 0 : index
    %c0_61 = arith.constant 0 : index
    %106 = vector.load %arg2[%c0_60, %c0_61] : memref<128x27xf32, #tpu.memory_space<vmem>>, vector<128x27xf32>
    %107 = vector.broadcast %105 : vector<1x27xf32> to vector<128x27xf32>
    %108 = arith.subf %106, %107 : vector<128x27xf32>
    %109 = math.absf %108 : vector<128x27xf32>
    %cst_62 = arith.constant dense<0.000000e+00> : vector<128xf32>
    %110 = vector.multi_reduction <add>, %109, %cst_62 [1] : vector<128x27xf32> to vector<128xf32>
    %111 = vector.shape_cast %110 : vector<128xf32> to vector<128x1xf32>
    %112 = tpu.concatenate %6, %13, %20, %27, %34, %41, %48, %55, %62, %69, %76, %83, %90, %97, %104, %111 in 1 : vector<128x1xf32>, vector<128x1xf32>, vector<128x1xf32>, vector<128x1xf32>, vector<128x1xf32>, vector<128x1xf32>, vector<128x1xf32>, vector<128x1xf32>, vector<128x1xf32>, vector<128x1xf32>, vector<128x1xf32>, vector<128x1xf32>, vector<128x1xf32>, vector<128x1xf32>, vector<128x1xf32>, vector<128x1xf32> -> vector<128x16xf32>
    %113 = vector.shape_cast %112 : vector<128x16xf32> to vector<1x128x16xf32>
    %c0_63 = arith.constant 0 : index
    %c0_64 = arith.constant 0 : index
    %c0_65 = arith.constant 0 : index
    %114 = vector.load %arg4[%c0_63, %c0_64, %c0_65] : memref<1x1x16xf32, #tpu.memory_space<vmem>>, vector<1x1x16xf32>
    %115 = vector.broadcast %114 : vector<1x1x16xf32> to vector<1x128x16xf32>
    %116 = arith.mulf %113, %115 : vector<1x128x16xf32>
    %c0_66 = arith.constant 0 : index
    %c0_67 = arith.constant 0 : index
    %c0_68 = arith.constant 0 : index
    %117 = vector.load %arg5[%c0_66, %c0_67, %c0_68] : memref<1x1x16xf32, #tpu.memory_space<vmem>>, vector<1x1x16xf32>
    %118 = vector.broadcast %117 : vector<1x1x16xf32> to vector<1x128x16xf32>
    %119 = arith.addf %116, %118 : vector<1x128x16xf32>
    %cst_69 = arith.constant 0.000000e+00 : f32
    %120 = vector.broadcast %cst_69 : f32 to vector<1x128x16xf32>
    %121 = arith.maximumf %119, %120 : vector<1x128x16xf32>
    %c0_70 = arith.constant 0 : index
    %c0_71 = arith.constant 0 : index
    %c0_72 = arith.constant 0 : index
    %122 = vector.load %arg6[%c0_70, %c0_71, %c0_72] : memref<1x128x16xf32, #tpu.memory_space<vmem>>, vector<1x128x16xf32>
    tpu.vector_store %arg6[%c0_70, %c0_71, %c0_72], %121 {strides = array<i32>} : memref<1x128x16xf32, #tpu.memory_space<vmem>>, vector<1x128x16xf32>,
    return
  }
  func.func @transform_0(%arg0: i32, %arg1: i32) -> (i32, i32) {
    %c0_i32 = arith.constant 0 : i32
    %c0_i32_0 = arith.constant 0 : i32
    return %arg0, %c0_i32 : i32, i32
  }
  func.func @transform_1(%arg0: i32, %arg1: i32) -> (i32, i32) {
    %c0_i32 = arith.constant 0 : i32
    %c0_i32_0 = arith.constant 0 : i32
    return %arg1, %c0_i32 : i32, i32
  }
  func.func @transform_2(%arg0: i32, %arg1: i32) -> (i32, i32, i32) {
    %c0_i32 = arith.constant 0 : i32
    %c0_i32_0 = arith.constant 0 : i32
    %c0_i32_1 = arith.constant 0 : i32
    return %arg1, %c0_i32, %c0_i32_0 : i32, i32, i32
  }
  func.func @transform_3(%arg0: i32, %arg1: i32) -> (i32, i32, i32) {
    %c0_i32 = arith.constant 0 : i32
    %c0_i32_0 = arith.constant 0 : i32
    %c0_i32_1 = arith.constant 0 : i32
    return %arg1, %c0_i32, %c0_i32_0 : i32, i32, i32
  }
  func.func @transform_4(%arg0: i32, %arg1: i32) -> (i32, i32, i32) {
    %c0_i32 = arith.constant 0 : i32
    %c0_i32_0 = arith.constant 0 : i32
    return %arg1, %arg0, %c0_i32 : i32, i32, i32
  }
}

</mosaic_0001>

<bundles_post_ra>
// kernel: _adder_bn_relu_nhwc.1
= control target key start
LH: loop header
LB: loop body
LE: loop exit
PB: predicated region body
PF: predicated region fallthrough
CT: control target
= control target key end

     0   :  { %s2267_s15 = smov 0   ;;  %s2269_s16 = smov 0   ;;  %s4252_s0 = inlined_call_operand.vmem [shape: f32[512,27], index: 0, kind: input, shape index: {}]   ;;  %s4253_s1 = inlined_call_operand.vmem [shape: f32[32,27], index: 1, kind: input, shape index: {}]   ;;  %s4254_s2 = inlined_call_operand.vmem [shape: f32[2,1,16], index: 2, kind: input, shape index: {}]   ;;  %s4255_s3 = inlined_call_operand.vmem [shape: f32[2,1,16], index: 3, kind: input, shape index: {}]   ;;  %s4256_s4 = inlined_call_operand.vmem [shape: f32[2,512,16], index: 4, kind: output, shape index: {}]  }
   0x1   :  { %s2271_s17 = smov 0   ;;  %s2273_s18 = smov 0  }
   0x2   :  { %s2275_s19 = smov 0  }
   0x3 LB: > { %s23_s20 = sadd.s32 1, %s2232_s17  ;;  %s26_s21 = sadd.s32 1, %s2236_s18  ;;  %s2240_s19 = sphi %s2275_s19, %s14_s19   ;;  %s2236_s18 = sphi %s2273_s18, %s4260_s18   ;;  %s2232_s17 = sphi %s2271_s17, %s4259_s17   ;;  %s2228_s16 = sphi %s2269_s16, %s4258_s16   ;;  %s2224_s15 = sphi %s2267_s15, %s4257_s15  }
   0x4   : > { %p24_p0 = scmp.ge.s32.totalorder %s23_s20, 2  ;;  %p2102_p1 = scmp.ge.s32.totalorder %s2240_s19, 1 }
   0x5   : > { %p204_p2 = scmp.lt.s32.totalorder %s2240_s19, 9 }
   0x6   : > { %s4262_s20 = smov (%p24_p0, %s23_s20), 0  ;;  %s4264_s21 = smov (!%p24_p0, %s26_s21), %s2236_s18 }
   0x7   : > { %p205_p3 = pnand %p2102_p1, %p204_p2  ;;  %p28_p4 = scmp.ge.s32.totalorder %s4264_s21, 4 }
   0x8   : > { %s2103_s22 = sshll.u32 (!%p205_p3), %s2228_s16, 4  ;;  %s2105_s23 = sshll.u32 (!%p205_p3), %s2224_s15, 1 }
   0x9   : > { %s4266_s21 = smov (%p28_p4, %s4264_s21), 0  ;;  %208 = sbr.rel (%p205_p3) target bundleno = 678 (0x2a6), region = 36 }
   0xa   : > { %p246_p5 = scmp.lt.s32.totalorder (!%p205_p3), %s2103_s22, 63  ;;  %p252_p6 = scmp.lt.s32.totalorder (!%p205_p3), %s2105_s23, 3 }
   0xb   : > { %p257_p7 = scmp.lt.s32.totalorder (!%p205_p3), %s2224_s15, 1 }
   0xe   : > { %s4268_s22 = smov (!%p246_p5, %s2103_s22), 63  ;;  %s4270_s23 = smov (!%p252_p6, %s2105_s23), 3  ;;  %vm326_vm0 = vcmask 220160   ;;  %vm1650_vm1 = vcmask 7168   ;;  %vm1667_vm2 = vcmask 15360   ;;  %vm1684_vm3 = vcmask 23552  }
   0xf   : > { %s2104_s24 = sshll.u32 %s4268_s22, 3  ;;  %s2106_s28 = sshll.u32 %s4270_s23, 3  ;;  %vm1701_vm4 = vcmask 31744   ;;  %vm1718_vm5 = vcmask 39936   ;;  %vm1735_vm6 = vcmask 48128   ;;  %vm1752_vm7 = vcmask 56320  }
  0x10   : > { %s2306_s27 = scalar_lea.vmem %s4252_s0, %s2104_s24  ;;  %s2311_s5 = scalar_lea.vmem %s4253_s1, %s2106_s28  ;;  %vm1769_vm8 = vcmask 64512   ;;  %vm1786_vm9 = vcmask 72704   ;;  %vm1803_vm10 = vcmask 80896   ;;  %vm1820_vm11 = vcmask 89088  }
  0x11   : > { %v2314_v0 = vld [vmem:[%s2306_s27 + $0x10] sm:$0xff]  ;;  %v2317_v1 = vld [vmem:[%s2306_s27] sm:$0xff]  ;;  %v2320_v2 = vld [vmem:[%s2306_s27 + $0x18] sm:$0xff]  ;;  %vm1837_vm12 = vcmask 97280   ;;  %s4272_s15 = smov (!%p257_p7, %s2224_s15), 1  ;;  %vm1854_vm13 = vcmask 105472  }
  0x12   : > { %v2323_v3 = vld [vmem:[%s2311_s5] ss:$0 sm:$0xff]  ;;  %v2326_v4 = vld [vmem:[%s2306_s27 + $0x8] sm:$0xff]  ;;  %v2345_v12 = vld [vmem:[%s2306_s27 + $0x38] sm:$0xff]  ;;  %s259_s8 = scalar_lea.vmem %s4254_s2, %s4272_s15  ;;  %s2108_s9 = sshll.u32 %s4272_s15, 6  ;;  %vm1871_vm14 = vcmask 113664  }
  0x13   : > { %v2329_v5 = vld [vmem:[%s2306_s27 + $0x28] sm:$0xff]  ;;  %v296_v6 = vsub.f32 %v2314_v0, %v2323_v3  ;;  %v294_v7 = vsub.f32 %v2317_v1, %v2323_v3  ;;  %v297_v8 = vsub.f32 %v2320_v2, %v2323_v3  ;;  %v295_v9 = vsub.f32 %v2326_v4, %v2323_v3  ;;  %v2340_v10 = vld [vmem:[%s2306_s27 + $0x20] sm:$0xff]  ;;  %v2348_v13 = vld [vmem:[%s2306_s27 + $0x30] sm:$0xff]  ;;  %s262_s12 = scalar_lea.vmem %s4255_s3, %s4272_s15  ;;  %s269_s13 = sadd.s32 %s2108_s9, %s4268_s22 }
  0x14   : > { %v299_v11 = vsub.f32 %v2329_v5, %v2323_v3  ;;  %v298_v17 = vsub.f32 %v2340_v10, %v2323_v3  ;;  %v301_v21 = vsub.f32 %v2345_v12, %v2323_v3  ;;  %v300_v22 = vsub.f32 %v2348_v13, %v2323_v3  ;;  %v2359_v23 = vld [vmem:[%s2306_s27 + $0x48] sm:$0xff]  ;;  %v2364_v28 = vld [vmem:[%s2306_s27 + $0x40] sm:$0xff]  ;;  %v2373_v35 = vld [vmem:[%s2306_s27 + $0x58] sm:$0xff]  ;;  %s2109_s14 = sshll.u32 %s269_s13, 3 }
  0x15   : > { %v312_v14 = vand.u32 2147483647, %v296_v6  ;;  %v310_v15 = vand.u32 2147483647, %v294_v7  ;;  %v313_v16 = vand.u32 2147483647, %v297_v8  ;;  %v303_v30 = vsub.f32 %v2359_v23, %v2323_v3  ;;  %s4103_s22 = scalar_lea.vmem %s4256_s4, %s2109_s14 }
  0x16   : > { %v311_v18 = vand.u32 2147483647, %v295_v9  ;;  %v315_v26 = vand.u32 2147483647, %v299_v11  ;;  %v314_v27 = vand.u32 2147483647, %v298_v17  ;;  %v302_v34 = vsub.f32 %v2364_v28, %v2323_v3 }
  0x17   : > { %v333_v19 = vsel %vm326_vm0, %v312_v14, 0.0  ;;  %v327_v20 = vsel %vm326_vm0, %v310_v15, 0.0  ;;  %v336_v24 = vsel %vm326_vm0, %v313_v16, 0.0  ;;  %v317_v29 = vand.u32 2147483647, %v301_v21  ;;  %v2376_v36 = vld [vmem:[%s2306_s27 + $0x50] sm:$0xff] }
  0x18   : > { %334 = vadd.xlane.f32.xlu1 %v333_v19  ;;  %328 = vadd.xlane.f32.xlu0 %v327_v20  ;;  %v330_v25 = vsel %vm326_vm0, %v311_v18, 0.0  ;;  %v342_v31 = vsel %vm326_vm0, %v315_v26, 0.0  ;;  %v339_v32 = vsel %vm326_vm0, %v314_v27, 0.0  ;;  %v316_v33 = vand.u32 2147483647, %v300_v22  ;;  %v2385_v43 = vld [vmem:[%s2306_s27 + $0x68] sm:$0xff] }
  0x19   : > { %v348_v37 = vsel %vm326_vm0, %v317_v29, 0.0  ;;  %v319_v38 = vand.u32 2147483647, %v303_v30  ;;  %v318_v40 = vand.u32 2147483647, %v302_v34  ;;  %v305_v41 = vsub.f32 %v2373_v35, %v2323_v3  ;;  %v2388_v44 = vld [vmem:[%s2306_s27 + $0x60] sm:$0xff] }
  0x1a   : > { %v345_v39 = vsel %vm326_vm0, %v316_v33, 0.0  ;;  %v304_v42 = vsub.f32 %v2376_v36, %v2323_v3  ;;  %v307_v45 = vsub.f32 %v2385_v43, %v2323_v3  ;;  %v306_v46 = vsub.f32 %v2388_v44, %v2323_v3  ;;  %v2395_v47 = vld [vmem:[%s2306_s27 + $0x78] sm:$0xff]  ;;  %v2400_v52 = vld [vmem:[%s2306_s27 + $0x70] sm:$0xff]  ;;  %v2409_v59 = vld [vmem:[%s2311_s5 + $0x1] ss:$0 sm:$0xff] }
  0x1b   : > { %v354_v48 = vsel %vm326_vm0, %v319_v38, 0.0  ;;  %v351_v49 = vsel %vm326_vm0, %v318_v40, 0.0  ;;  %v321_v50 = vand.u32 2147483647, %v305_v41  ;;  %v309_v54 = vsub.f32 %v2395_v47, %v2323_v3 }
  0x1c   : > { %337 = vadd.xlane.f32.xlu1 %v336_v24  ;;  %331 = vadd.xlane.f32.xlu0 %v330_v25  ;;  %v320_v51 = vand.u32 2147483647, %v304_v42  ;;  %v323_v53 = vand.u32 2147483647, %v307_v45  ;;  %v322_v57 = vand.u32 2147483647, %v306_v46  ;;  %v308_v58 = vsub.f32 %v2400_v52, %v2323_v3 }
  0x1d   : > { %v360_v55 = vsel %vm326_vm0, %v321_v50, 0.0  ;;  %v325_v60 = vand.u32 2147483647, %v309_v54  ;;  %v381_v61 = vsub.f32 %v2326_v4, %v2409_v59  ;;  %v380_v7 = vsub.f32 %v2317_v1, %v2409_v59 }
  0x1e   : > { %v357_v56 = vsel %vm326_vm0, %v320_v51, 0.0  ;;  %v366_v62 = vsel %vm326_vm0, %v323_v53, 0.0  ;;  %v363_v63 = vsel %vm326_vm0, %v322_v57, 0.0  ;;  %v324_v6 = vand.u32 2147483647, %v308_v58 }
  0x1f   : > { %v372_v3 = vsel %vm326_vm0, %v325_v60, 0.0  ;;  %v397_v8 = vand.u32 2147483647, %v381_v61  ;;  %v396_v11 = vand.u32 2147483647, %v380_v7  ;;  %v383_v14 = vsub.f32 %v2320_v2, %v2409_v59 }
  0x20   : > { %343 = vadd.xlane.f32.xlu1 %v342_v31  ;;  %340 = vadd.xlane.f32.xlu0 %v339_v32  ;;  %v369_v9 = vsel %vm326_vm0, %v324_v6, 0.0  ;;  %v382_v15 = vsub.f32 %v2314_v0, %v2409_v59  ;;  %v385_v16 = vsub.f32 %v2329_v5, %v2409_v59  ;;  %v384_v17 = vsub.f32 %v2340_v10, %v2409_v59  ;;  %v2460_v61 = vld [vmem:[%s2311_s5 + $0x2] ss:$0 sm:$0xff] }
  0x21   : > { %v415_v18 = vsel %vm326_vm0, %v397_v8, 0.0  ;;  %v412_v19 = vsel %vm326_vm0, %v396_v11, 0.0  ;;  %v399_v20 = vand.u32 2147483647, %v383_v14  ;;  %v387_v24 = vsub.f32 %v2345_v12, %v2409_v59 }
  0x22   : > { %v398_v21 = vand.u32 2147483647, %v382_v15  ;;  %v401_v22 = vand.u32 2147483647, %v385_v16  ;;  %v400_v27 = vand.u32 2147483647, %v384_v17  ;;  %v386_v29 = vsub.f32 %v2348_v13, %v2409_v59 }
  0x23   : > { %v421_v25 = vsel %vm326_vm0, %v399_v20, 0.0  ;;  %v403_v30 = vand.u32 2147483647, %v387_v24  ;;  %v389_v31 = vsub.f32 %v2359_v23, %v2409_v59  ;;  %v391_v42 = vsub.f32 %v2373_v35, %v2409_v59 }
  0x24   : > { %349 = vadd.xlane.f32.xlu1 %v348_v37  ;;  %346 = vadd.xlane.f32.xlu0 %v345_v39  ;;  %v418_v26 = vsel %vm326_vm0, %v398_v21, 0.0  ;;  %v427_v32 = vsel %vm326_vm0, %v401_v22, 0.0  ;;  %v424_v33 = vsel %vm326_vm0, %v400_v27, 0.0  ;;  %v402_v34 = vand.u32 2147483647, %v386_v29 }
  0x25   : > { %v388_v37 = vsub.f32 %v2364_v28, %v2409_v59  ;;  %v433_v38 = vsel %vm326_vm0, %v403_v30, 0.0  ;;  %v405_v39 = vand.u32 2147483647, %v389_v31  ;;  %v390_v45 = vsub.f32 %v2376_v36, %v2409_v59 }
  0x26   : > { %v430_v40 = vsel %vm326_vm0, %v402_v34, 0.0  ;;  %v393_v46 = vsub.f32 %v2385_v43, %v2409_v59  ;;  %v407_v51 = vand.u32 2147483647, %v391_v42  ;;  %v394_v60 = vsub.f32 %v2400_v52, %v2409_v59 }
  0x27   : > { %v404_v41 = vand.u32 2147483647, %v388_v37  ;;  %v406_v53 = vand.u32 2147483647, %v390_v45  ;;  %v465_v8 = vsub.f32 %v2317_v1, %v2460_v61  ;;  %v468_v15 = vsub.f32 %v2320_v2, %v2460_v61 }
  0x28   : > { %355 = vadd.xlane.f32.xlu1 %v354_v48  ;;  %352 = vadd.xlane.f32.xlu0 %v351_v49  ;;  %v392_v48 = vsub.f32 %v2388_v44, %v2409_v59  ;;  %v439_v49 = vsel %vm326_vm0, %v405_v39, 0.0  ;;  %v409_v54 = vand.u32 2147483647, %v393_v46  ;;  %v467_v16 = vsub.f32 %v2314_v0, %v2460_v61 }
  0x29   : > { %v436_v50 = vsel %vm326_vm0, %v404_v41, 0.0  ;;  %v442_v57 = vsel %vm326_vm0, %v406_v53, 0.0  ;;  %v481_v14 = vand.u32 2147483647, %v465_v8  ;;  %v470_v17 = vsub.f32 %v2329_v5, %v2460_v61 }
  0x2a   : > { %v408_v58 = vand.u32 2147483647, %v392_v48  ;;  %v451_v6 = vsel %vm326_vm0, %v409_v54, 0.0  ;;  %v484_v21 = vand.u32 2147483647, %v468_v15  ;;  %v471_v30 = vsub.f32 %v2348_v13, %v2460_v61 }
  0x2b   : > { %v497_v20 = vsel %vm326_vm0, %v481_v14, 0.0  ;;  %v483_v22 = vand.u32 2147483647, %v467_v16  ;;  %v486_v24 = vand.u32 2147483647, %v470_v17  ;;  %v476_v45 = vsub.f32 %v2373_v35, %v2460_v61 }
  0x2c   : > { %361 = vadd.xlane.f32.xlu1 %v360_v55  ;;  %358 = vadd.xlane.f32.xlu0 %v357_v56  ;;  %v395_v55 = vsub.f32 %v2395_v47, %v2409_v59  ;;  %v445_v56 = vsel %vm326_vm0, %v407_v51, 0.0  ;;  %v448_v7 = vsel %vm326_vm0, %v408_v58, 0.0  ;;  %v487_v37 = vand.u32 2147483647, %v471_v30 }
  0x2d   : > { %v503_v27 = vsel %vm326_vm0, %v483_v22, 0.0  ;;  %v475_v46 = vsub.f32 %v2376_v36, %v2460_v61  ;;  %v478_v48 = vsub.f32 %v2385_v43, %v2460_v61  ;;  %v492_v53 = vand.u32 2147483647, %v476_v45 }
  0x2e   : > { %v515_v41 = vsel %vm326_vm0, %v487_v37, 0.0  ;;  %vm1888_vm15 = vcmask 121856  }
  0x2f   : > { %v491_v54 = vand.u32 2147483647, %v475_v46 }
  0x30   : > { %367 = vadd.xlane.f32.xlu1 %v366_v62  ;;  %364 = vadd.xlane.f32.xlu0 %v363_v63  ;;  %v411_v62 = vand.u32 2147483647, %v395_v55  ;;  %v466_v63 = vsub.f32 %v2326_v4, %v2460_v61  ;;  %v494_v55 = vand.u32 2147483647, %v478_v48 }
  0x31   : > { %v527_v58 = vsel %vm326_vm0, %v491_v54, 0.0 }
  0x32   : > { %v457_v59 = vsel %vm326_vm0, %v411_v62, 0.0  ;;  %v479_v62 = vsub.f32 %v2400_v52, %v2460_v61 }
  0x34   : > { %373 = vadd.xlane.f32.xlu1 %v372_v3  ;;  %370 = vadd.xlane.f32.xlu0 %v369_v9  ;;  %v410_v3 = vand.u32 2147483647, %v394_v60  ;;  %v482_v9 = vand.u32 2147483647, %v466_v63  ;;  %v2511_v63 = vld [vmem:[%s2311_s5 + $0x3] ss:$0 sm:$0xff] }
  0x35   : > { %v553_v16 = vsub.f32 %v2320_v2, %v2511_v63  ;;  %v552_v17 = vsub.f32 %v2314_v0, %v2511_v63  ;;  %v561_v46 = vsub.f32 %v2373_v35, %v2511_v63  ;;  %v560_v48 = vsub.f32 %v2376_v36, %v2511_v63 }
  0x36   : > { %v454_v11 = vsel %vm326_vm0, %v410_v3, 0.0  ;;  %v536_v3 = vsel %vm326_vm0, %v494_v55, 0.0 }
  0x37   : > { %v569_v22 = vand.u32 2147483647, %v553_v16  ;;  %v577_v54 = vand.u32 2147483647, %v561_v46  ;;  %v576_v55 = vand.u32 2147483647, %v560_v48 }
  0x38   : > { %416 = vadd.xlane.f32.xlu1 %v415_v18  ;;  %413 = vadd.xlane.f32.xlu0 %v412_v19  ;;  %v469_v18 = vsub.f32 %v2340_v10, %v2460_v61  ;;  %v500_v19 = vsel %vm326_vm0, %v482_v9, 0.0  ;;  %v550_v9 = vsub.f32 %v2317_v1, %v2511_v63 }
  0x3a   : > { %v485_v29 = vand.u32 2147483647, %v469_v18  ;;  %v566_v15 = vand.u32 2147483647, %v550_v9  ;;  %v555_v18 = vsub.f32 %v2329_v5, %v2511_v63 }
  0x3c   : > { %422 = vadd.xlane.f32.xlu1 %v421_v25  ;;  %419 = vadd.xlane.f32.xlu0 %v418_v26  ;;  %v472_v25 = vsub.f32 %v2345_v12, %v2460_v61  ;;  %v506_v26 = vsel %vm326_vm0, %v484_v21, 0.0  ;;  %v509_v34 = vsel %vm326_vm0, %v485_v29, 0.0  ;;  %v582_v21 = vsel %vm326_vm0, %v566_v15, 0.0 }
  0x3e   : > { %v488_v31 = vand.u32 2147483647, %v472_v25  ;;  %v571_v25 = vand.u32 2147483647, %v555_v18 }
  0x40   : > { %428 = vadd.xlane.f32.xlu1 %v427_v32  ;;  %425 = vadd.xlane.f32.xlu0 %v424_v33  ;;  %v474_v32 = vsub.f32 %v2359_v23, %v2460_v61  ;;  %v512_v33 = vsel %vm326_vm0, %v486_v24, 0.0  ;;  %v518_v39 = vsel %vm326_vm0, %v488_v31, 0.0  ;;  %v568_v24 = vand.u32 2147483647, %v552_v17 }
  0x41   : > { %v556_v31 = vsub.f32 %v2348_v13, %v2511_v63 }
  0x42   : > { %v588_v29 = vsel %vm326_vm0, %v568_v24, 0.0 }
  0x44   : > { %434 = vadd.xlane.f32.xlu1 %v433_v38  ;;  %431 = vadd.xlane.f32.xlu0 %v430_v40  ;;  %v473_v38 = vsub.f32 %v2364_v28, %v2460_v61  ;;  %v490_v40 = vand.u32 2147483647, %v474_v32 }
  0x46   : > { %v489_v42 = vand.u32 2147483647, %v473_v38  ;;  %v572_v38 = vand.u32 2147483647, %v556_v31 }
  0x48   : > { %440 = vadd.xlane.f32.xlu1 %v439_v49  ;;  %437 = vadd.xlane.f32.xlu0 %v436_v50  ;;  %v477_v49 = vsub.f32 %v2388_v44, %v2460_v61  ;;  %v524_v50 = vsel %vm326_vm0, %v490_v40, 0.0  ;;  %v521_v51 = vsel %vm326_vm0, %v489_v42, 0.0  ;;  %v600_v42 = vsel %vm326_vm0, %v572_v38, 0.0 }
  0x4a   : > { %v493_v60 = vand.u32 2147483647, %v477_v49  ;;  %v563_v49 = vsub.f32 %v2385_v43, %v2511_v63 }
  0x4c   : > { %446 = vadd.xlane.f32.xlu1 %v445_v56  ;;  %443 = vadd.xlane.f32.xlu0 %v442_v57  ;;  %v480_v56 = vsub.f32 %v2395_v47, %v2460_v61  ;;  %v530_v57 = vsel %vm326_vm0, %v492_v53, 0.0  ;;  %v533_v8 = vsel %vm326_vm0, %v493_v60, 0.0  ;;  %v612_v60 = vsel %vm326_vm0, %v576_v55, 0.0 }
  0x50   : > { %452 = vadd.xlane.f32.xlu1 %v451_v6  ;;  %449 = vadd.xlane.f32.xlu0 %v448_v7  ;;  %v496_v6 = vand.u32 2147483647, %v480_v56  ;;  %v551_v7 = vsub.f32 %v2326_v4, %v2511_v63  ;;  %v579_v56 = vand.u32 2147483647, %v563_v49 }
  0x52   : > { %v542_v61 = vsel %vm326_vm0, %v496_v6, 0.0  ;;  %v564_v6 = vsub.f32 %v2400_v52, %v2511_v63 }
  0x54   : > { %458 = vadd.xlane.f32.xlu1 %v457_v59  ;;  %455 = vadd.xlane.f32.xlu0 %v454_v11  ;;  %v495_v59 = vand.u32 2147483647, %v479_v62  ;;  %v567_v11 = vand.u32 2147483647, %v551_v7  ;;  %v2562_v7 = vld [vmem:[%s2311_s5 + $0x4] ss:$0 sm:$0xff] }
  0x55   : > { %v638_v17 = vsub.f32 %v2320_v2, %v2562_v7  ;;  %v637_v18 = vsub.f32 %v2314_v0, %v2562_v7 }
  0x56   : > { %v539_v14 = vsel %vm326_vm0, %v495_v59, 0.0  ;;  %v621_v59 = vsel %vm326_vm0, %v579_v56, 0.0 }
  0x57   : > { %v654_v24 = vand.u32 2147483647, %v638_v17 }
  0x58   : > { %501 = vadd.xlane.f32.xlu1 %v500_v19  ;;  %498 = vadd.xlane.f32.xlu0 %v497_v20  ;;  %v554_v19 = vsub.f32 %v2340_v10, %v2511_v63  ;;  %v585_v20 = vsel %vm326_vm0, %v567_v11, 0.0  ;;  %v635_v11 = vsub.f32 %v2317_v1, %v2562_v7 }
  0x5a   : > { %v570_v30 = vand.u32 2147483647, %v554_v19  ;;  %v651_v16 = vand.u32 2147483647, %v635_v11  ;;  %v640_v19 = vsub.f32 %v2329_v5, %v2562_v7 }
  0x5c   : > { %507 = vadd.xlane.f32.xlu1 %v506_v26  ;;  %504 = vadd.xlane.f32.xlu0 %v503_v27  ;;  %v557_v26 = vsub.f32 %v2345_v12, %v2511_v63  ;;  %v591_v27 = vsel %vm326_vm0, %v569_v22, 0.0  ;;  %v594_v37 = vsel %vm326_vm0, %v570_v30, 0.0  ;;  %v667_v22 = vsel %vm326_vm0, %v651_v16, 0.0 }
  0x5e   : > { %v573_v32 = vand.u32 2147483647, %v557_v26  ;;  %v656_v26 = vand.u32 2147483647, %v640_v19 }
  0x60   : > { %513 = vadd.xlane.f32.xlu1 %v512_v33  ;;  %510 = vadd.xlane.f32.xlu0 %v509_v34  ;;  %v559_v33 = vsub.f32 %v2359_v23, %v2511_v63  ;;  %v597_v34 = vsel %vm326_vm0, %v571_v25, 0.0  ;;  %v603_v40 = vsel %vm326_vm0, %v573_v32, 0.0  ;;  %v653_v25 = vand.u32 2147483647, %v637_v18 }
  0x61   : > { %v641_v32 = vsub.f32 %v2348_v13, %v2562_v7 }
  0x62   : > { %v673_v30 = vsel %vm326_vm0, %v653_v25, 0.0 }
  0x64   : > { %519 = vadd.xlane.f32.xlu1 %v518_v39  ;;  %516 = vadd.xlane.f32.xlu0 %v515_v41  ;;  %v558_v39 = vsub.f32 %v2364_v28, %v2511_v63  ;;  %v575_v41 = vand.u32 2147483647, %v559_v33 }
  0x66   : > { %v574_v45 = vand.u32 2147483647, %v558_v39  ;;  %v657_v39 = vand.u32 2147483647, %v641_v32 }
  0x68   : > { %525 = vadd.xlane.f32.xlu1 %v524_v50  ;;  %522 = vadd.xlane.f32.xlu0 %v521_v51  ;;  %v562_v50 = vsub.f32 %v2388_v44, %v2511_v63  ;;  %v609_v51 = vsel %vm326_vm0, %v575_v41, 0.0  ;;  %v606_v53 = vsel %vm326_vm0, %v574_v45, 0.0  ;;  %v685_v48 = vsel %vm326_vm0, %v657_v39, 0.0 }
  0x6a   : > { %v578_v62 = vand.u32 2147483647, %v562_v50  ;;  %v646_v50 = vsub.f32 %v2373_v35, %v2562_v7 }
  0x6c   : > { %531 = vadd.xlane.f32.xlu1 %v530_v57  ;;  %528 = vadd.xlane.f32.xlu0 %v527_v58  ;;  %v565_v57 = vsub.f32 %v2395_v47, %v2511_v63  ;;  %v615_v58 = vsel %vm326_vm0, %v577_v54, 0.0  ;;  %v618_v9 = vsel %vm326_vm0, %v578_v62, 0.0  ;;  %v647_v54 = vsub.f32 %v2388_v44, %v2562_v7 }
  0x6e   : > { %v663_v11 = vand.u32 2147483647, %v647_v54 }
  0x70   : > { %537 = vadd.xlane.f32.xlu1 %v536_v3  ;;  %534 = vadd.xlane.f32.xlu0 %v533_v8  ;;  %v581_v3 = vand.u32 2147483647, %v565_v57  ;;  %v636_v8 = vsub.f32 %v2326_v4, %v2562_v7 }
  0x72   : > { %v627_v63 = vsel %vm326_vm0, %v581_v3, 0.0  ;;  %v650_v3 = vsub.f32 %v2395_v47, %v2562_v7 }
  0x74   : > { %543 = vadd.xlane.f32.xlu1 %v542_v61  ;;  %540 = vadd.xlane.f32.xlu0 %v539_v14  ;;  %v580_v61 = vand.u32 2147483647, %v564_v6  ;;  %v652_v14 = vand.u32 2147483647, %v636_v8 }
  0x76   : > { %v624_v15 = vsel %vm326_vm0, %v580_v61, 0.0 }
  0x78   : > { %586 = vadd.xlane.f32.xlu1 %v585_v20  ;;  %583 = vadd.xlane.f32.xlu0 %v582_v21  ;;  %v639_v20 = vsub.f32 %v2340_v10, %v2562_v7  ;;  %v670_v21 = vsel %vm326_vm0, %v652_v14, 0.0  ;;  %v2625_v14 = vld [vmem:[%s2311_s5 + $0x5] ss:$0 sm:$0xff] }
  0x79   : > { %v721_v16 = vsub.f32 %v2326_v4, %v2625_v14  ;;  %v725_v32 = vsub.f32 %v2329_v5, %v2625_v14  ;;  %v727_v54 = vsub.f32 %v2345_v12, %v2625_v14 }
  0x7a   : > { %v655_v31 = vand.u32 2147483647, %v639_v20  ;;  %v703_v20 = vsel %vm326_vm0, %v663_v11, 0.0 }
  0x7c   : > { %592 = vadd.xlane.f32.xlu1 %v591_v27  ;;  %589 = vadd.xlane.f32.xlu0 %v588_v29  ;;  %v642_v27 = vsub.f32 %v2345_v12, %v2562_v7  ;;  %v676_v29 = vsel %vm326_vm0, %v654_v24, 0.0  ;;  %v679_v38 = vsel %vm326_vm0, %v655_v31, 0.0  ;;  %v737_v24 = vand.u32 2147483647, %v721_v16 }
  0x7d   : > { %v722_v31 = vsub.f32 %v2314_v0, %v2625_v14 }
  0x7e   : > { %v658_v33 = vand.u32 2147483647, %v642_v27 }
  0x80   : > { %598 = vadd.xlane.f32.xlu1 %v597_v34  ;;  %595 = vadd.xlane.f32.xlu0 %v594_v37  ;;  %v644_v34 = vsub.f32 %v2359_v23, %v2562_v7  ;;  %v682_v37 = vsel %vm326_vm0, %v656_v26, 0.0  ;;  %v688_v41 = vsel %vm326_vm0, %v658_v33, 0.0  ;;  %v724_v33 = vsub.f32 %v2340_v10, %v2625_v14 }
  0x84   : > { %604 = vadd.xlane.f32.xlu1 %v603_v40  ;;  %601 = vadd.xlane.f32.xlu0 %v600_v42  ;;  %v643_v40 = vsub.f32 %v2364_v28, %v2562_v7  ;;  %v660_v42 = vand.u32 2147483647, %v644_v34 }
  0x86   : > { %v659_v49 = vand.u32 2147483647, %v643_v40  ;;  %v694_v57 = vsel %vm326_vm0, %v660_v42, 0.0  ;;  %v741_v42 = vand.u32 2147483647, %v725_v32 }
  0x88   : > { %610 = vadd.xlane.f32.xlu1 %v609_v51  ;;  %607 = vadd.xlane.f32.xlu0 %v606_v53  ;;  %v645_v51 = vsub.f32 %v2376_v36, %v2562_v7  ;;  %v648_v53 = vsub.f32 %v2385_v43, %v2562_v7 }
  0x8a   : > { %v661_v62 = vand.u32 2147483647, %v645_v51  ;;  %v664_v6 = vand.u32 2147483647, %v648_v53 }
  0x8c   : > { %616 = vadd.xlane.f32.xlu1 %v615_v58  ;;  %613 = vadd.xlane.f32.xlu0 %v612_v60  ;;  %v691_v58 = vsel %vm326_vm0, %v659_v49, 0.0  ;;  %v662_v60 = vand.u32 2147483647, %v646_v50  ;;  %v697_v61 = vsel %vm326_vm0, %v661_v62, 0.0  ;;  %v706_v19 = vsel %vm326_vm0, %v664_v6, 0.0 }
  0x90   : > { %622 = vadd.xlane.f32.xlu1 %v621_v59  ;;  %619 = vadd.xlane.f32.xlu0 %v618_v9  ;;  %v700_v9 = vsel %vm326_vm0, %v662_v60, 0.0  ;;  %v728_v60 = vsub.f32 %v2364_v28, %v2625_v14 }
  0x94   : > { %628 = vadd.xlane.f32.xlu1 %v627_v63  ;;  %625 = vadd.xlane.f32.xlu0 %v624_v15  ;;  %v649_v63 = vsub.f32 %v2400_v52, %v2562_v7  ;;  %v666_v15 = vand.u32 2147483647, %v650_v3  ;;  %v720_v7 = vsub.f32 %v2317_v1, %v2625_v14  ;;  %v767_v3 = vsel %vm326_vm0, %v741_v42, 0.0 }
  0x98   : > { %671 = vadd.xlane.f32.xlu1 %v670_v21  ;;  %668 = vadd.xlane.f32.xlu0 %v667_v22  ;;  %v665_v21 = vand.u32 2147483647, %v649_v63  ;;  %v712_v22 = vsel %vm326_vm0, %v666_v15, 0.0  ;;  %v744_v15 = vand.u32 2147483647, %v728_v60 }
  0x9a   : > { %v709_v27 = vsel %vm326_vm0, %v665_v21, 0.0 }
  0x9c   : > { %677 = vadd.xlane.f32.xlu1 %v676_v29  ;;  %674 = vadd.xlane.f32.xlu0 %v673_v30  ;;  %v736_v29 = vand.u32 2147483647, %v720_v7  ;;  %v723_v30 = vsub.f32 %v2320_v2, %v2625_v14  ;;  %v731_v7 = vsub.f32 %v2373_v35, %v2625_v14 }
  0x9e   : > { %v752_v39 = vsel %vm326_vm0, %v736_v29, 0.0  ;;  %v739_v40 = vand.u32 2147483647, %v723_v30  ;;  %v733_v29 = vsub.f32 %v2385_v43, %v2625_v14  ;;  %v732_v30 = vsub.f32 %v2388_v44, %v2625_v14 }
  0xa0   : > { %683 = vadd.xlane.f32.xlu1 %v682_v37  ;;  %680 = vadd.xlane.f32.xlu0 %v679_v38  ;;  %v755_v38 = vsel %vm326_vm0, %v737_v24, 0.0  ;;  %v761_v51 = vsel %vm326_vm0, %v739_v40, 0.0  ;;  %v748_v42 = vand.u32 2147483647, %v732_v30 }
  0xa1   : > { %v2595_v45 = vpop.xlane.xlu1 %334  ;;  %v2597_v46 = vpop.xlane.xlu0 %328 }
  0xa4   : > { %689 = vadd.xlane.f32.xlu1 %v688_v41  ;;  %686 = vadd.xlane.f32.xlu0 %v685_v48  ;;  %v738_v41 = vand.u32 2147483647, %v722_v31  ;;  %v740_v48 = vand.u32 2147483647, %v724_v33 }
  0xa5   : > { %v2608_v55 = vpop.xlane.xlu1 %337  ;;  %v2610_v56 = vpop.xlane.xlu0 %331 }
  0xa6   : > { %v758_v53 = vsel %vm326_vm0, %v738_v41, 0.0  ;;  %v749_v41 = vand.u32 2147483647, %v733_v29 }
  0xa8   : > { %695 = vadd.xlane.f32.xlu1 %v694_v57  ;;  %692 = vadd.xlane.f32.xlu0 %v691_v58  ;;  %v726_v57 = vsub.f32 %v2348_v13, %v2625_v14  ;;  %v729_v58 = vsub.f32 %v2359_v23, %v2625_v14 }
  0xa9   : > { %v2616_v8 = vpop.xlane.xlu1 %343  ;;  %v2618_v59 = vpop.xlane.xlu0 %340 }
  0xaa   : > { %v742_v11 = vand.u32 2147483647, %v726_v57  ;;  %v745_v63 = vand.u32 2147483647, %v729_v58  ;;  %v735_v57 = vsub.f32 %v2395_v47, %v2625_v14  ;;  %v2712_v58 = vld [vmem:[%s2311_s5 + $0x6] ss:$0 sm:$0xff] }
  0xab   : > { %v810_v30 = vsub.f32 %v2329_v5, %v2712_v58 }
  0xac   : > { %701 = vadd.xlane.f32.xlu1 %v700_v9  ;;  %698 = vadd.xlane.f32.xlu0 %v697_v61  ;;  %v764_v9 = vsel %vm326_vm0, %v740_v48, 0.0  ;;  %v743_v61 = vand.u32 2147483647, %v727_v54  ;;  %v770_v21 = vsel %vm326_vm0, %v742_v11, 0.0  ;;  %v779_v33 = vsel %vm326_vm0, %v745_v63, 0.0 }
  0xad   : > { %v2629_v17 = vpop.xlane.xlu1 %349  ;;  %v2631_v18 = vpop.xlane.xlu0 %346  ;;  %v791_v11 = vsel %vm326_vm0, %v749_v41, 0.0  ;;  %v788_v63 = vsel %vm326_vm0, %v748_v42, 0.0  ;;  %v826_v5 = vand.u32 2147483647, %v810_v30 }
  0xb0   : > { %707 = vadd.xlane.f32.xlu1 %v706_v19  ;;  %704 = vadd.xlane.f32.xlu0 %v703_v20  ;;  %v773_v20 = vsel %vm326_vm0, %v743_v61, 0.0 }
  0xb1   : > { %v2638_v25 = vpop.xlane.xlu1 %355  ;;  %v2640_v26 = vpop.xlane.xlu0 %352 }
  0xb4   : > { %713 = vadd.xlane.f32.xlu1 %v712_v22  ;;  %710 = vadd.xlane.f32.xlu0 %v709_v27  ;;  %v730_v22 = vsub.f32 %v2376_v36, %v2625_v14 }
  0xb5   : > { %v2651_v34 = vpop.xlane.xlu1 %361  ;;  %v2653_v37 = vpop.xlane.xlu0 %358 }
  0xb8   : > { %756 = vadd.xlane.f32.xlu1 %v755_v38  ;;  %753 = vadd.xlane.f32.xlu0 %v752_v39  ;;  %v747_v38 = vand.u32 2147483647, %v731_v7  ;;  %v746_v39 = vand.u32 2147483647, %v730_v22  ;;  %v808_v22 = vsub.f32 %v2320_v2, %v2712_v58 }
  0xb9   : > { %v2657_v49 = vpop.xlane.xlu1 %367  ;;  %v2659_v50 = vpop.xlane.xlu0 %364 }
  0xba   : > { %v782_v54 = vsel %vm326_vm0, %v746_v39, 0.0 }
  0xbc   : > { %762 = vadd.xlane.f32.xlu1 %v761_v51  ;;  %759 = vadd.xlane.f32.xlu0 %v758_v53  ;;  %v785_v53 = vsel %vm326_vm0, %v747_v38, 0.0 }
  0xbd   : > { %v2671_v62 = vpop.xlane.xlu1 %373  ;;  %v2673_v6 = vpop.xlane.xlu0 %370 }
  0xc0   : > { %768 = vadd.xlane.f32.xlu1 %v767_v3  ;;  %765 = vadd.xlane.f32.xlu0 %v764_v9  ;;  %v806_v3 = vsub.f32 %v2326_v4, %v2712_v58  ;;  %v805_v9 = vsub.f32 %v2317_v1, %v2712_v58 }
  0xc1   : > { %v417_v16 = vpop.xlane.xlu1 %416  ;;  %v414_v19 = vpop.xlane.xlu0 %413 }
  0xc2   : > { %v2685_v24 = vsel %vm1650_vm1, %v2610_v56, %v417_v16  ;;  %v2689_v27 = vsel %vm1650_vm1, %v2597_v46, %v414_v19  ;;  %v776_v56 = vsel %vm326_vm0, %v744_v15, 0.0  ;;  %v822_v4 = vand.u32 2147483647, %v806_v3 }
  0xc3   : > { %v821_v1 = vand.u32 2147483647, %v805_v9 }
  0xc4   : > { %774 = vadd.xlane.f32.xlu1 %v773_v20  ;;  %771 = vadd.xlane.f32.xlu0 %v770_v21 }
  0xc5   : > { %v423_v31 = vpop.xlane.xlu1 %422  ;;  %v420_v32 = vpop.xlane.xlu0 %419 }
  0xc6   : > { %v2699_v46 = vsel %vm1650_vm1, %v2608_v55, %v423_v31  ;;  %v2703_v40 = vsel %vm1650_vm1, %v2595_v45, %v420_v32  ;;  %v734_v55 = vsub.f32 %v2400_v52, %v2625_v14  ;;  %v809_v31 = vsub.f32 %v2340_v10, %v2712_v58 }
  0xc8   : > { %780 = vadd.xlane.f32.xlu1 %v779_v33  ;;  %777 = vadd.xlane.f32.xlu0 %v776_v56  ;;  %v750_v15 = vand.u32 2147483647, %v734_v55  ;;  %v837_v33 = vsel %vm326_vm0, %v821_v1, 0.0  ;;  %v825_v10 = vand.u32 2147483647, %v809_v31 }
  0xc9   : > { %v429_v48 = vpop.xlane.xlu1 %428  ;;  %v426_v51 = vpop.xlane.xlu0 %425 }
  0xca   : > { %v2716_v45 = vsel %vm1650_vm1, %v2616_v8, %v429_v48  ;;  %v2720_v60 = vsel %vm1650_vm1, %v2618_v59, %v426_v51  ;;  %v751_v8 = vand.u32 2147483647, %v735_v57  ;;  %v794_v7 = vsel %vm326_vm0, %v750_v15, 0.0 }
  0xcb   : > { %v812_v51 = vsub.f32 %v2345_v12, %v2712_v58  ;;  %v849_v57 = vsel %vm326_vm0, %v825_v10, 0.0 }
  0xcc   : > { %786 = vadd.xlane.f32.xlu1 %v785_v53  ;;  %783 = vadd.xlane.f32.xlu0 %v782_v54  ;;  %v797_v21 = vsel %vm326_vm0, %v751_v8, 0.0  ;;  %v852_v54 = vsel %vm326_vm0, %v826_v5, 0.0 }
  0xcd   : > { %v435_v61 = vpop.xlane.xlu1 %434  ;;  %v432_v14 = vpop.xlane.xlu0 %431  ;;  %v828_v12 = vand.u32 2147483647, %v812_v51 }
  0xce   : > { %v2730_v59 = vsel %vm1650_vm1, %v2629_v17, %v435_v61  ;;  %v2734_v16 = vsel %vm1650_vm1, %v2631_v18, %v432_v14  ;;  %v807_v17 = vsub.f32 %v2314_v0, %v2712_v58  ;;  %v840_v0 = vsel %vm326_vm0, %v822_v4, 0.0 }
  0xcf   : > { %v816_v14 = vsub.f32 %v2373_v35, %v2712_v58 }
  0xd0   : > { %792 = vadd.xlane.f32.xlu1 %v791_v11  ;;  %789 = vadd.xlane.f32.xlu0 %v788_v63  ;;  %v823_v56 = vand.u32 2147483647, %v807_v17 }
  0xd1   : > { %v441_v19 = vpop.xlane.xlu1 %440  ;;  %v438_v20 = vpop.xlane.xlu0 %437  ;;  %v832_v35 = vand.u32 2147483647, %v816_v14 }
  0xd2   : > { %v2744_v18 = vsel %vm1650_vm1, %v2638_v25, %v441_v19  ;;  %v2748_v29 = vsel %vm1650_vm1, %v2640_v26, %v438_v20  ;;  %v824_v25 = vand.u32 2147483647, %v808_v22  ;;  %v843_v48 = vsel %vm326_vm0, %v823_v56, 0.0  ;;  %v2843_v56 = vld [vmem:[%s2306_s27] sm:$0xff] }
  0xd3   : > { %v870_v17 = vsel %vm326_vm0, %v832_v35, 0.0 }
  0xd4   : > { %798 = vadd.xlane.f32.xlu1 %v797_v21  ;;  %795 = vadd.xlane.f32.xlu0 %v794_v7  ;;  %v846_v42 = vsel %vm326_vm0, %v824_v25, 0.0  ;;  %v818_v7 = vsub.f32 %v2385_v43, %v2712_v58  ;;  %v2838_v25 = vld [vmem:[%s2306_s27 + $0x8] sm:$0xff] }
  0xd5   : > { %v447_v2 = vpop.xlane.xlu1 %446  ;;  %v444_v32 = vpop.xlane.xlu0 %443 }
  0xd6   : > { %v2758_v26 = vsel %vm1650_vm1, %v2651_v34, %v447_v2  ;;  %v2762_v38 = vsel %vm1650_vm1, %v2653_v37, %v444_v32  ;;  %v811_v34 = vsub.f32 %v2348_v13, %v2712_v58  ;;  %v814_v13 = vsub.f32 %v2359_v23, %v2712_v58 }
  0xd7   : > { %v815_v23 = vsub.f32 %v2376_v36, %v2712_v58  ;;  %v834_v2 = vand.u32 2147483647, %v818_v7  ;;  %v819_v32 = vsub.f32 %v2400_v52, %v2712_v58 }
  0xd8   : > { %841 = vadd.xlane.f32.xlu1 %v840_v0  ;;  %838 = vadd.xlane.f32.xlu0 %v837_v33  ;;  %v827_v9 = vand.u32 2147483647, %v811_v34  ;;  %v830_v8 = vand.u32 2147483647, %v814_v13 }
  0xd9   : > { %v453_v39 = vpop.xlane.xlu1 %452  ;;  %v450_v41 = vpop.xlane.xlu0 %449  ;;  %v831_v36 = vand.u32 2147483647, %v815_v23  ;;  %v876_v5 = vsel %vm326_vm0, %v834_v2, 0.0 }
  0xda   : > { %v2772_v37 = vsel %vm1650_vm1, %v2657_v49, %v453_v39  ;;  %v2776_v53 = vsel %vm1650_vm1, %v2659_v50, %v450_v41  ;;  %v813_v49 = vsub.f32 %v2364_v28, %v2712_v58  ;;  %v858_v28 = vsel %vm326_vm0, %v828_v12, 0.0  ;;  %v2865_v12 = vld [vmem:[%s2306_s27 + $0x10] sm:$0xff] }
  0xdb   : > { %v864_v20 = vsel %vm326_vm0, %v830_v8, 0.0  ;;  %v867_v30 = vsel %vm326_vm0, %v831_v36, 0.0  ;;  %v835_v39 = vand.u32 2147483647, %v819_v32  ;;  %v2885_v8 = vld [vmem:[%s2306_s27 + $0x20] sm:$0xff]  ;;  %v2898_v36 = vld [vmem:[%s2306_s27 + $0x38] sm:$0xff] }
  0xdc   : > { %847 = vadd.xlane.f32.xlu1 %v846_v42  ;;  %844 = vadd.xlane.f32.xlu0 %v843_v48  ;;  %v829_v15 = vand.u32 2147483647, %v813_v49 }
  0xdd   : > { %v459_v55 = vpop.xlane.xlu1 %458  ;;  %v456_v3 = vpop.xlane.xlu0 %455 }
  0xde   : > { %v2786_v50 = vsel %vm1650_vm1, %v2671_v62, %v459_v55  ;;  %v2790_v61 = vsel %vm1650_vm1, %v2673_v6, %v456_v3  ;;  %v855_v62 = vsel %vm326_vm0, %v827_v9, 0.0  ;;  %v861_v21 = vsel %vm326_vm0, %v829_v15, 0.0  ;;  %v2860_v3 = vld [vmem:[%s2306_s27 + $0x18] sm:$0xff] }
  0xdf   : > { %v879_v55 = vsel %vm326_vm0, %v835_v39, 0.0 }
  0xe0   : > { %853 = vadd.xlane.f32.xlu1 %v852_v54  ;;  %850 = vadd.xlane.f32.xlu0 %v849_v57 }
  0xe1   : > { %v502_v11 = vpop.xlane.xlu1 %501  ;;  %v499_v63 = vpop.xlane.xlu0 %498 }
  0xe2   : > { %v2800_v6 = vsel %vm1667_vm2, %v2685_v24, %v502_v11  ;;  %v2804_v4 = vsel %vm1667_vm2, %v2689_v27, %v499_v63  ;;  %v817_v24 = vsub.f32 %v2388_v44, %v2712_v58 }
  0xe4   : > { %859 = vadd.xlane.f32.xlu1 %v858_v28  ;;  %856 = vadd.xlane.f32.xlu0 %v855_v62  ;;  %v833_v44 = vand.u32 2147483647, %v817_v24  ;;  %v2880_v62 = vld [vmem:[%s2306_s27 + $0x28] sm:$0xff] }
  0xe5   : > { %v508_v1 = vpop.xlane.xlu1 %507  ;;  %v505_v19 = vpop.xlane.xlu0 %504 }
  0xe6   : > { %v2814_v27 = vsel %vm1667_vm2, %v2699_v46, %v508_v1  ;;  %v2818_v22 = vsel %vm1667_vm2, %v2703_v40, %v505_v19  ;;  %v820_v46 = vsub.f32 %v2395_v47, %v2712_v58  ;;  %v2827_v40 = vld [vmem:[%s2311_s5 + $0x7] ss:$0 sm:$0xff]  ;;  %v2903_v19 = vld [vmem:[%s2306_s27 + $0x30] sm:$0xff] }
  0xe7   : > { %v891_v47 = vsub.f32 %v2838_v25, %v2827_v40  ;;  %v890_v52 = vsub.f32 %v2843_v56, %v2827_v40  ;;  %v897_v1 = vsub.f32 %v2898_v36, %v2827_v40 }
  0xe8   : > { %865 = vadd.xlane.f32.xlu1 %v864_v20  ;;  %862 = vadd.xlane.f32.xlu0 %v861_v21  ;;  %v836_v10 = vand.u32 2147483647, %v820_v46  ;;  %v896_v20 = vsub.f32 %v2903_v19, %v2827_v40 }
  0xe9   : > { %v514_v43 = vpop.xlane.xlu1 %513  ;;  %v511_v31 = vpop.xlane.xlu0 %510  ;;  %v907_v48 = vand.u32 2147483647, %v891_v47  ;;  %v906_v51 = vand.u32 2147483647, %v890_v52  ;;  %v2920_v52 = vld [vmem:[%s2306_s27 + $0x48] sm:$0xff] }
  0xea   : > { %v2831_v0 = vsel %vm1667_vm2, %v2716_v45, %v514_v43  ;;  %v2835_v33 = vsel %vm1667_vm2, %v2720_v60, %v511_v31  ;;  %v873_v60 = vsel %vm326_vm0, %v833_v44, 0.0  ;;  %v882_v57 = vsel %vm326_vm0, %v836_v10, 0.0 }
  0xeb   : > { %v925_v49 = vsel %vm326_vm0, %v907_v48, 0.0  ;;  %v922_v14 = vsel %vm326_vm0, %v906_v51, 0.0  ;;  %v913_v31 = vand.u32 2147483647, %v897_v1  ;;  %v912_v2 = vand.u32 2147483647, %v896_v20 }
  0xec   : > { %871 = vadd.xlane.f32.xlu1 %v870_v17  ;;  %868 = vadd.xlane.f32.xlu0 %v867_v30 }
  0xed   : > { %v520_v58 = vpop.xlane.xlu1 %519  ;;  %v517_v45 = vpop.xlane.xlu0 %516  ;;  %v940_v10 = vsel %vm326_vm0, %v912_v2, 0.0 }
  0xee   : > { %v2851_v41 = vsel %vm1667_vm2, %v2730_v59, %v520_v58  ;;  %v2855_v42 = vsel %vm1667_vm2, %v2734_v16, %v517_v45  ;;  %v893_v59 = vsub.f32 %v2860_v3, %v2827_v40  ;;  %v892_v16 = vsub.f32 %v2865_v12, %v2827_v40  ;;  %v2925_v58 = vld [vmem:[%s2306_s27 + $0x40] sm:$0xff] }
  0xf0   : > { %877 = vadd.xlane.f32.xlu1 %v876_v5  ;;  %874 = vadd.xlane.f32.xlu0 %v873_v60  ;;  %v909_v63 = vand.u32 2147483647, %v893_v59  ;;  %v908_v28 = vand.u32 2147483647, %v892_v16  ;;  %v943_v60 = vsel %vm326_vm0, %v913_v31, 0.0  ;;  %v2958_v16 = vld [vmem:[%s2306_s27 + $0x68] sm:$0xff] }
  0xf1   : > { %v526_v34 = vpop.xlane.xlu1 %525  ;;  %v523_v54 = vpop.xlane.xlu0 %522  ;;  %v2985_v31 = vld [vmem:[%s2306_s27 + $0x70] sm:$0xff] }
  0xf2   : > { %v2871_v9 = vsel %vm1667_vm2, %v2744_v18, %v526_v34  ;;  %v2875_v13 = vsel %vm1667_vm2, %v2748_v29, %v523_v54  ;;  %v895_v18 = vsub.f32 %v2880_v62, %v2827_v40  ;;  %v894_v29 = vsub.f32 %v2885_v8, %v2827_v40  ;;  %v2940_v54 = vld [vmem:[%s2306_s27 + $0x58] sm:$0xff] }
  0xf3   : > { %v931_v7 = vsel %vm326_vm0, %v909_v63, 0.0 }
  0xf4   : > { %883 = vadd.xlane.f32.xlu1 %v882_v57  ;;  %880 = vadd.xlane.f32.xlu0 %v879_v55  ;;  %v911_v24 = vand.u32 2147483647, %v895_v18  ;;  %v910_v17 = vand.u32 2147483647, %v894_v29 }
  0xf5   : > { %v532_v23 = vpop.xlane.xlu1 %531  ;;  %v529_v11 = vpop.xlane.xlu0 %528 }
  0xf6   : > { %v2891_v15 = vsel %vm1667_vm2, %v2758_v26, %v532_v23  ;;  %v2895_v35 = vsel %vm1667_vm2, %v2762_v38, %v529_v11  ;;  %v928_v38 = vsel %vm326_vm0, %v908_v28, 0.0  ;;  %v937_v32 = vsel %vm326_vm0, %v911_v24, 0.0 }
  0xf7   : > { %v934_v47 = vsel %vm326_vm0, %v910_v17, 0.0  ;;  %v2980_v17 = vld [vmem:[%s2306_s27 + $0x78] sm:$0xff] }
  0xf8   : > { %926 = vadd.xlane.f32.xlu1 %v925_v49  ;;  %923 = vadd.xlane.f32.xlu0 %v922_v14  ;;  %v903_v49 = vsub.f32 %v2958_v16, %v2827_v40  ;;  %v2963_v14 = vld [vmem:[%s2306_s27 + $0x60] sm:$0xff] }
  0xf9   : > { %v538_v21 = vpop.xlane.xlu1 %537  ;;  %v535_v26 = vpop.xlane.xlu0 %534  ;;  %v902_v23 = vsub.f32 %v2963_v14, %v2827_v40 }
  0xfa   : > { %v2911_v30 = vsel %vm1667_vm2, %v2772_v37, %v538_v21  ;;  %v2915_v43 = vsel %vm1667_vm2, %v2776_v53, %v535_v26  ;;  %v899_v37 = vsub.f32 %v2920_v52, %v2827_v40  ;;  %v898_v53 = vsub.f32 %v2925_v58, %v2827_v40 }
  0xfb   : > { %v919_v20 = vand.u32 2147483647, %v903_v49  ;;  %v918_v21 = vand.u32 2147483647, %v902_v23 }
  0xfc   : > { %932 = vadd.xlane.f32.xlu1 %v931_v7  ;;  %929 = vadd.xlane.f32.xlu0 %v928_v38  ;;  %v915_v51 = vand.u32 2147483647, %v899_v37  ;;  %v914_v34 = vand.u32 2147483647, %v898_v53 }
  0xfd   : > { %v544_v44 = vpop.xlane.xlu1 %543  ;;  %v541_v46 = vpop.xlane.xlu0 %540 }
  0xfe   : > { %v2931_v45 = vsel %vm1667_vm2, %v2786_v50, %v544_v44  ;;  %v2935_v5 = vsel %vm1667_vm2, %v2790_v61, %v541_v46  ;;  %v901_v50 = vsub.f32 %v2940_v54, %v2827_v40  ;;  %v2945_v61 = vld [vmem:[%s2306_s27 + $0x50] sm:$0xff]  ;;  %v949_v63 = vsel %vm326_vm0, %v915_v51, 0.0  ;;  %v2998_v46 = vld [vmem:[%s2311_s5 + $0x8] ss:$0 sm:$0xff] }
  0xff   : > { %v900_v57 = vsub.f32 %v2945_v61, %v2827_v40  ;;  %v977_v51 = vsub.f32 %v2865_v12, %v2998_v46 }
 0x100   : > { %938 = vadd.xlane.f32.xlu1 %v937_v32  ;;  %935 = vadd.xlane.f32.xlu0 %v934_v47  ;;  %v917_v28 = vand.u32 2147483647, %v901_v50  ;;  %v961_v32 = vsel %vm326_vm0, %v919_v20, 0.0  ;;  %v958_v47 = vsel %vm326_vm0, %v918_v21, 0.0  ;;  %v980_v21 = vsub.f32 %v2880_v62, %v2998_v46 }
 0x101   : > { %v587_v39 = vpop.xlane.xlu1 %586  ;;  %v584_v48 = vpop.xlane.xlu0 %583  ;;  %v916_v18 = vand.u32 2147483647, %v900_v57 }
 0x102   : > { %v2951_v55 = vsel %vm1684_vm3, %v2800_v6, %v587_v39  ;;  %v2955_v59 = vsel %vm1684_vm3, %v2804_v4, %v584_v48  ;;  %v946_v4 = vsel %vm326_vm0, %v914_v34, 0.0  ;;  %v955_v38 = vsel %vm326_vm0, %v917_v28, 0.0 }
 0x103   : > { %v952_v24 = vsel %vm326_vm0, %v916_v18, 0.0  ;;  %v978_v48 = vsub.f32 %v2860_v3, %v2998_v46 }
 0x104   : > { %944 = vadd.xlane.f32.xlu1 %v943_v60  ;;  %941 = vadd.xlane.f32.xlu0 %v940_v10  ;;  %v975_v10 = vsub.f32 %v2843_v56, %v2998_v46 }
 0x105   : > { %v593_v11 = vpop.xlane.xlu1 %592  ;;  %v590_v6 = vpop.xlane.xlu0 %589 }
 0x106   : > { %v2971_v29 = vsel %vm1684_vm3, %v2814_v27, %v593_v11  ;;  %v2975_v1 = vsel %vm1684_vm3, %v2818_v22, %v590_v6  ;;  %v905_v27 = vsub.f32 %v2980_v17, %v2827_v40  ;;  %v904_v22 = vsub.f32 %v2985_v31, %v2827_v40 }
 0x107   : > { %v991_v23 = vand.u32 2147483647, %v975_v10  ;;  %v994_v6 = vand.u32 2147483647, %v978_v48 }
 0x108   : > { %950 = vadd.xlane.f32.xlu1 %v949_v63  ;;  %947 = vadd.xlane.f32.xlu0 %v946_v4  ;;  %v921_v60 = vand.u32 2147483647, %v905_v27  ;;  %v920_v40 = vand.u32 2147483647, %v904_v22  ;;  %v993_v63 = vand.u32 2147483647, %v977_v51 }
 0x109   : > { %v599_v26 = vpop.xlane.xlu1 %598  ;;  %v596_v7 = vpop.xlane.xlu0 %595  ;;  %v1007_v20 = vsel %vm326_vm0, %v991_v23, 0.0  ;;  %v996_v22 = vand.u32 2147483647, %v980_v21 }
 0x10a   : > { %v2991_v2 = vsel %vm1684_vm3, %v2831_v0, %v599_v26  ;;  %v2995_v44 = vsel %vm1684_vm3, %v2835_v33, %v596_v7  ;;  %v976_v0 = vsub.f32 %v2838_v25, %v2998_v46  ;;  %v967_v57 = vsel %vm326_vm0, %v921_v60, 0.0 }
 0x10b   : > { %v964_v49 = vsel %vm326_vm0, %v920_v40, 0.0  ;;  %v1016_v7 = vsel %vm326_vm0, %v994_v6, 0.0  ;;  %v983_v60 = vsub.f32 %v2925_v58, %v2998_v46  ;;  %v1022_v10 = vsel %vm326_vm0, %v996_v22, 0.0 }
 0x10c   : > { %956 = vadd.xlane.f32.xlu1 %v955_v38  ;;  %953 = vadd.xlane.f32.xlu0 %v952_v24  ;;  %v1013_v38 = vsel %vm326_vm0, %v993_v63, 0.0  ;;  %v986_v63 = vsub.f32 %v2940_v54, %v2998_v46  ;;  %v989_v22 = vsub.f32 %v2985_v31, %v2998_v46 }
 0x10d   : > { %v605_v37 = vpop.xlane.xlu1 %604  ;;  %v602_v53 = vpop.xlane.xlu0 %601 }
 0x10e   : > { %v3008_v33 = vsel %vm1684_vm3, %v2851_v41, %v605_v37  ;;  %v3012_v39 = vsel %vm1684_vm3, %v2855_v42, %v602_v53  ;;  %v992_v41 = vand.u32 2147483647, %v976_v0  ;;  %v984_v53 = vsub.f32 %v2920_v52, %v2998_v46 }
 0x110   : > { %962 = vadd.xlane.f32.xlu1 %v961_v32  ;;  %959 = vadd.xlane.f32.xlu0 %v958_v47  ;;  %v1010_v18 = vsel %vm326_vm0, %v992_v41, 0.0  ;;  %v982_v47 = vsub.f32 %v2898_v36, %v2998_v46 }
 0x111   : > { %v611_v34 = vpop.xlane.xlu1 %610  ;;  %v608_v50 = vpop.xlane.xlu0 %607 }
 0x112   : > { %v3022_v42 = vsel %vm1684_vm3, %v2871_v9, %v611_v34  ;;  %v3026_v11 = vsel %vm1684_vm3, %v2875_v13, %v608_v50  ;;  %v979_v9 = vsub.f32 %v2885_v8, %v2998_v46  ;;  %v1000_v50 = vand.u32 2147483647, %v984_v53 }
 0x114   : > { %968 = vadd.xlane.f32.xlu1 %v967_v57  ;;  %965 = vadd.xlane.f32.xlu0 %v964_v49  ;;  %v995_v32 = vand.u32 2147483647, %v979_v9  ;;  %v999_v57 = vand.u32 2147483647, %v983_v60  ;;  %v1002_v9 = vand.u32 2147483647, %v986_v63 }
 0x115   : > { %v617_v4 = vpop.xlane.xlu1 %616  ;;  %v614_v28 = vpop.xlane.xlu0 %613 }
 0x116   : > { %v3036_v13 = vsel %vm1684_vm3, %v2891_v15, %v617_v4  ;;  %v3040_v26 = vsel %vm1684_vm3, %v2895_v35, %v614_v28  ;;  %v981_v15 = vsub.f32 %v2903_v19, %v2998_v46  ;;  %v1019_v48 = vsel %vm326_vm0, %v995_v32, 0.0 }
 0x117   : > { %v1034_v28 = vsel %vm326_vm0, %v1000_v50, 0.0 }
 0x118   : > { %1011 = vadd.xlane.f32.xlu1 %v1010_v18  ;;  %1008 = vadd.xlane.f32.xlu0 %v1007_v20  ;;  %v997_v51 = vand.u32 2147483647, %v981_v15  ;;  %v1031_v18 = vsel %vm326_vm0, %v999_v57, 0.0  ;;  %v1040_v15 = vsel %vm326_vm0, %v1002_v9, 0.0 }
 0x119   : > { %v623_v24 = vpop.xlane.xlu1 %622  ;;  %v620_v27 = vpop.xlane.xlu0 %619 }
 0x11a   : > { %v3050_v35 = vsel %vm1684_vm3, %v2911_v30, %v623_v24  ;;  %v3054_v37 = vsel %vm1684_vm3, %v2915_v43, %v620_v27  ;;  %v998_v30 = vand.u32 2147483647, %v982_v47  ;;  %v1025_v6 = vsel %vm326_vm0, %v997_v51, 0.0 }
 0x11b   : > { %v990_v27 = vsub.f32 %v2980_v17, %v2998_v46 }
 0x11c   : > { %1017 = vadd.xlane.f32.xlu1 %v1016_v7  ;;  %1014 = vadd.xlane.f32.xlu0 %v1013_v38  ;;  %v1028_v23 = vsel %vm326_vm0, %v998_v30, 0.0  ;;  %v988_v38 = vsub.f32 %v2958_v16, %v2998_v46 }
 0x11d   : > { %v629_v40 = vpop.xlane.xlu1 %628  ;;  %v626_v0 = vpop.xlane.xlu0 %625 }
 0x11e   : > { %v3064_v43 = vsel %vm1684_vm3, %v2931_v45, %v629_v40  ;;  %v3068_v34 = vsel %vm1684_vm3, %v2935_v5, %v626_v0  ;;  %v985_v45 = vsub.f32 %v2945_v61, %v2998_v46  ;;  %v3113_v0 = vld [vmem:[%s2311_s5 + $0x9] ss:$0 sm:$0xff] }
 0x11f   : > { %v1060_v57 = vsub.f32 %v2843_v56, %v3113_v0  ;;  %v1064_v9 = vsub.f32 %v2885_v8, %v3113_v0 }
 0x120   : > { %1023 = vadd.xlane.f32.xlu1 %v1022_v10  ;;  %1020 = vadd.xlane.f32.xlu0 %v1019_v48  ;;  %v1001_v7 = vand.u32 2147483647, %v985_v45  ;;  %v1005_v10 = vand.u32 2147483647, %v989_v22 }
 0x121   : > { %v672_v49 = vpop.xlane.xlu1 %671  ;;  %v669_v41 = vpop.xlane.xlu0 %668 }
 0x122   : > { %v3078_v5 = vsel %vm1701_vm4, %v2951_v55, %v672_v49  ;;  %v3082_v4 = vsel %vm1701_vm4, %v2955_v59, %v669_v41  ;;  %v987_v55 = vsub.f32 %v2963_v14, %v2998_v46  ;;  %v1037_v53 = vsel %vm326_vm0, %v1001_v7, 0.0 }
 0x123   : > { %v1006_v46 = vand.u32 2147483647, %v990_v27 }
 0x124   : > { %1029 = vadd.xlane.f32.xlu1 %v1028_v23  ;;  %1026 = vadd.xlane.f32.xlu0 %v1025_v6  ;;  %v1003_v60 = vand.u32 2147483647, %v987_v55  ;;  %v1049_v23 = vsel %vm326_vm0, %v1005_v10, 0.0  ;;  %v1067_v10 = vsub.f32 %v2898_v36, %v3113_v0 }
 0x125   : > { %v678_v20 = vpop.xlane.xlu1 %677  ;;  %v675_v21 = vpop.xlane.xlu0 %674  ;;  %v1052_v41 = vsel %vm326_vm0, %v1006_v46, 0.0 }
 0x126   : > { %v3092_v59 = vsel %vm1701_vm4, %v2971_v29, %v678_v20  ;;  %v3096_v24 = vsel %vm1701_vm4, %v2975_v1, %v675_v21  ;;  %v1004_v29 = vand.u32 2147483647, %v988_v38  ;;  %v1043_v50 = vsel %vm326_vm0, %v1003_v60, 0.0 }
 0x127   : > { %v1065_v21 = vsub.f32 %v2880_v62, %v3113_v0 }
 0x128   : > { %1035 = vadd.xlane.f32.xlu1 %v1034_v28  ;;  %1032 = vadd.xlane.f32.xlu0 %v1031_v18  ;;  %v1046_v51 = vsel %vm326_vm0, %v1004_v29, 0.0  ;;  %v1076_v28 = vand.u32 2147483647, %v1060_v57  ;;  %v1063_v18 = vsub.f32 %v2860_v3, %v3113_v0  ;;  %v1083_v57 = vand.u32 2147483647, %v1067_v10 }
 0x129   : > { %v684_v32 = vpop.xlane.xlu1 %683  ;;  %v681_v47 = vpop.xlane.xlu0 %680 }
 0x12a   : > { %v3106_v1 = vsel %vm1701_vm4, %v2991_v2, %v684_v32  ;;  %v3110_v40 = vsel %vm1701_vm4, %v2995_v44, %v681_v47  ;;  %v1061_v2 = vsub.f32 %v2838_v25, %v3113_v0  ;;  %v1092_v27 = vsel %vm326_vm0, %v1076_v28, 0.0 }
 0x12b   : > { %v1081_v47 = vand.u32 2147483647, %v1065_v21 }
 0x12c   : > { %1041 = vadd.xlane.f32.xlu1 %v1040_v15  ;;  %1038 = vadd.xlane.f32.xlu0 %v1037_v53  ;;  %v1077_v45 = vand.u32 2147483647, %v1061_v2  ;;  %v1080_v15 = vand.u32 2147483647, %v1064_v9 }
 0x12d   : > { %v690_v48 = vpop.xlane.xlu1 %689  ;;  %v687_v30 = vpop.xlane.xlu0 %686 }
 0x12e   : > { %v3123_v44 = vsel %vm1701_vm4, %v3008_v33, %v690_v48  ;;  %v3127_v49 = vsel %vm1701_vm4, %v3012_v39, %v687_v30  ;;  %v1062_v33 = vsub.f32 %v2865_v12, %v3113_v0  ;;  %v1095_v55 = vsel %vm326_vm0, %v1077_v45, 0.0 }
 0x12f   : > { %v1107_v30 = vsel %vm326_vm0, %v1081_v47, 0.0  ;;  %v1070_v45 = vsub.f32 %v2945_v61, %v3113_v0 }
 0x130   : > { %1047 = vadd.xlane.f32.xlu1 %v1046_v51  ;;  %1044 = vadd.xlane.f32.xlu0 %v1043_v50  ;;  %v1078_v22 = vand.u32 2147483647, %v1062_v33  ;;  %v1104_v51 = vsel %vm326_vm0, %v1080_v15, 0.0  ;;  %v1113_v33 = vsel %vm326_vm0, %v1083_v57, 0.0  ;;  %v1073_v15 = vsub.f32 %v2958_v16, %v3113_v0 }
 0x131   : > { %v696_v6 = vpop.xlane.xlu1 %695  ;;  %v693_v63 = vpop.xlane.xlu0 %692 }
 0x132   : > { %v3137_v39 = vsel %vm1701_vm4, %v3022_v42, %v696_v6  ;;  %v3141_v20 = vsel %vm1701_vm4, %v3026_v11, %v693_v63  ;;  %v1079_v42 = vand.u32 2147483647, %v1063_v18  ;;  %v1098_v46 = vsel %vm326_vm0, %v1078_v22, 0.0 }
 0x133   : > { %v1071_v63 = vsub.f32 %v2940_v54, %v3113_v0 }
 0x134   : > { %1053 = vadd.xlane.f32.xlu1 %v1052_v41  ;;  %1050 = vadd.xlane.f32.xlu0 %v1049_v23  ;;  %v1101_v60 = vsel %vm326_vm0, %v1079_v42, 0.0  ;;  %v1069_v23 = vsub.f32 %v2920_v52, %v3113_v0 }
 0x135   : > { %v702_v7 = vpop.xlane.xlu1 %701  ;;  %v699_v38 = vpop.xlane.xlu0 %698 }
 0x136   : > { %v3151_v11 = vsel %vm1701_vm4, %v3036_v13, %v702_v7  ;;  %v3155_v32 = vsel %vm1701_vm4, %v3040_v26, %v699_v38  ;;  %v1066_v13 = vsub.f32 %v2903_v19, %v3113_v0  ;;  %v1085_v21 = vand.u32 2147483647, %v1069_v23 }
 0x137   : > { %v1087_v38 = vand.u32 2147483647, %v1071_v63 }
 0x138   : > { %1096 = vadd.xlane.f32.xlu1 %v1095_v55  ;;  %1093 = vadd.xlane.f32.xlu0 %v1092_v27  ;;  %v1082_v41 = vand.u32 2147483647, %v1066_v13  ;;  %v1086_v55 = vand.u32 2147483647, %v1070_v45  ;;  %v1119_v22 = vsel %vm326_vm0, %v1085_v21, 0.0 }
 0x139   : > { %v708_v53 = vpop.xlane.xlu1 %707  ;;  %v705_v29 = vpop.xlane.xlu0 %704  ;;  %v1089_v13 = vand.u32 2147483647, %v1073_v15 }
 0x13a   : > { %v3165_v26 = vsel %vm1701_vm4, %v3050_v35, %v708_v53  ;;  %v3169_v48 = vsel %vm1701_vm4, %v3054_v37, %v705_v29  ;;  %v1068_v35 = vsub.f32 %v2925_v58, %v3113_v0  ;;  %v1125_v29 = vsel %vm326_vm0, %v1087_v38, 0.0 }
 0x13c   : > { %1102 = vadd.xlane.f32.xlu1 %v1101_v60  ;;  %1099 = vadd.xlane.f32.xlu0 %v1098_v46  ;;  %v1084_v9 = vand.u32 2147483647, %v1068_v35  ;;  %v1122_v60 = vsel %vm326_vm0, %v1086_v55, 0.0  ;;  %v1131_v35 = vsel %vm326_vm0, %v1089_v13, 0.0 }
 0x13d   : > { %v714_v50 = vpop.xlane.xlu1 %713  ;;  %v711_v2 = vpop.xlane.xlu0 %710 }
 0x13e   : > { %v3179_v37 = vsel %vm1701_vm4, %v3064_v43, %v714_v50  ;;  %v3183_v6 = vsel %vm1701_vm4, %v3068_v34, %v711_v2  ;;  %v1110_v43 = vsel %vm326_vm0, %v1082_v41, 0.0  ;;  %v1116_v47 = vsel %vm326_vm0, %v1084_v9, 0.0  ;;  %v3220_v50 = vld [vmem:[%s2311_s5 + $0xa] ss:$0 sm:$0xff] }
 0x13f   : > { %v1146_v57 = vsub.f32 %v2838_v25, %v3220_v50  ;;  %v1145_v41 = vsub.f32 %v2843_v56, %v3220_v50  ;;  %v1148_v55 = vsub.f32 %v2860_v3, %v3220_v50  ;;  %v1151_v13 = vsub.f32 %v2903_v19, %v3220_v50 }
 0x140   : > { %1108 = vadd.xlane.f32.xlu1 %v1107_v30  ;;  %1105 = vadd.xlane.f32.xlu0 %v1104_v51  ;;  %v1075_v51 = vsub.f32 %v2980_v17, %v3113_v0 }
 0x141   : > { %v757_v28 = vpop.xlane.xlu1 %756  ;;  %v754_v18 = vpop.xlane.xlu0 %753 }
 0x142   : > { %v3193_v34 = vsel %vm1718_vm5, %v3078_v5, %v757_v28  ;;  %v3197_v7 = vsel %vm1718_vm5, %v3082_v4, %v754_v18  ;;  %v1072_v5 = vsub.f32 %v2963_v14, %v3113_v0  ;;  %v1162_v18 = vand.u32 2147483647, %v1146_v57 }
 0x144   : > { %1114 = vadd.xlane.f32.xlu1 %v1113_v33  ;;  %1111 = vadd.xlane.f32.xlu0 %v1110_v43  ;;  %v1088_v30 = vand.u32 2147483647, %v1072_v5  ;;  %v1161_v33 = vand.u32 2147483647, %v1145_v41  ;;  %v1164_v5 = vand.u32 2147483647, %v1148_v55 }
 0x145   : > { %v763_v27 = vpop.xlane.xlu1 %762  ;;  %v760_v42 = vpop.xlane.xlu0 %759 }
 0x146   : > { %v3207_v4 = vsel %vm1718_vm5, %v3092_v59, %v763_v27  ;;  %v3211_v53 = vsel %vm1718_vm5, %v3096_v24, %v760_v42  ;;  %v1074_v59 = vsub.f32 %v2985_v31, %v3113_v0  ;;  %v1128_v63 = vsel %vm326_vm0, %v1088_v30, 0.0 }
 0x147   : > { %v1180_v42 = vsel %vm326_vm0, %v1162_v18, 0.0 }
 0x148   : > { %1120 = vadd.xlane.f32.xlu1 %v1119_v22  ;;  %1117 = vadd.xlane.f32.xlu0 %v1116_v47  ;;  %v1090_v45 = vand.u32 2147483647, %v1074_v59  ;;  %v1177_v22 = vsel %vm326_vm0, %v1161_v33, 0.0  ;;  %v1186_v59 = vsel %vm326_vm0, %v1164_v5, 0.0  ;;  %v1154_v33 = vsub.f32 %v2920_v52, %v3220_v50 }
 0x149   : > { %v769_v46 = vpop.xlane.xlu1 %768  ;;  %v766_v10 = vpop.xlane.xlu0 %765  ;;  %v1157_v5 = vsub.f32 %v2963_v14, %v3220_v50 }
 0x14a   : > { %v3224_v24 = vsel %vm1718_vm5, %v3106_v1, %v769_v46  ;;  %v3228_v2 = vsel %vm1718_vm5, %v3110_v40, %v766_v10  ;;  %v1091_v1 = vand.u32 2147483647, %v1075_v51  ;;  %v1134_v38 = vsel %vm326_vm0, %v1090_v45, 0.0 }
 0x14b   : > { %v1152_v10 = vsub.f32 %v2898_v36, %v3220_v50 }
 0x14c   : > { %1126 = vadd.xlane.f32.xlu1 %v1125_v29  ;;  %1123 = vadd.xlane.f32.xlu0 %v1122_v60  ;;  %v1137_v9 = vsel %vm326_vm0, %v1091_v1, 0.0  ;;  %v1150_v60 = vsub.f32 %v2880_v62, %v3220_v50 }
 0x14d   : > { %v775_v23 = vpop.xlane.xlu1 %774  ;;  %v772_v0 = vpop.xlane.xlu0 %771 }
 0x14e   : > { %v3238_v40 = vsel %vm1718_vm5, %v3123_v44, %v775_v23  ;;  %v3242_v28 = vsel %vm1718_vm5, %v3127_v49, %v772_v0  ;;  %v1147_v44 = vsub.f32 %v2865_v12, %v3220_v50  ;;  %v1168_v0 = vand.u32 2147483647, %v1152_v10 }
 0x150   : > { %1132 = vadd.xlane.f32.xlu1 %v1131_v35  ;;  %1129 = vadd.xlane.f32.xlu0 %v1128_v63  ;;  %v1163_v29 = vand.u32 2147483647, %v1147_v44  ;;  %v1167_v35 = vand.u32 2147483647, %v1151_v13  ;;  %v1170_v44 = vand.u32 2147483647, %v1154_v33 }
 0x151   : > { %v781_v43 = vpop.xlane.xlu1 %780  ;;  %v778_v21 = vpop.xlane.xlu0 %777 }
 0x152   : > { %v3252_v49 = vsel %vm1718_vm5, %v3137_v39, %v781_v43  ;;  %v3256_v27 = vsel %vm1718_vm5, %v3141_v20, %v778_v21  ;;  %v1149_v39 = vsub.f32 %v2885_v8, %v3220_v50  ;;  %v1183_v57 = vsel %vm326_vm0, %v1163_v29, 0.0 }
 0x153   : > { %v1198_v21 = vsel %vm326_vm0, %v1168_v0, 0.0 }
 0x154   : > { %1138 = vadd.xlane.f32.xlu1 %v1137_v9  ;;  %1135 = vadd.xlane.f32.xlu0 %v1134_v38  ;;  %v1165_v41 = vand.u32 2147483647, %v1149_v39  ;;  %v1195_v9 = vsel %vm326_vm0, %v1167_v35, 0.0  ;;  %v1204_v39 = vsel %vm326_vm0, %v1170_v44, 0.0  ;;  %v1160_v35 = vsub.f32 %v2980_v17, %v3220_v50 }
 0x155   : > { %v787_v47 = vpop.xlane.xlu1 %786  ;;  %v784_v15 = vpop.xlane.xlu0 %783 }
 0x156   : > { %v3266_v20 = vsel %vm1718_vm5, %v3151_v11, %v787_v47  ;;  %v3270_v46 = vsel %vm1718_vm5, %v3155_v32, %v784_v15  ;;  %v1166_v11 = vand.u32 2147483647, %v1150_v60  ;;  %v1189_v18 = vsel %vm326_vm0, %v1165_v41, 0.0 }
 0x157   : > { %v1158_v15 = vsub.f32 %v2958_v16, %v3220_v50 }
 0x158   : > { %1181 = vadd.xlane.f32.xlu1 %v1180_v42  ;;  %1178 = vadd.xlane.f32.xlu0 %v1177_v22  ;;  %v1192_v45 = vsel %vm326_vm0, %v1166_v11, 0.0  ;;  %v1156_v22 = vsub.f32 %v2940_v54, %v3220_v50 }
 0x159   : > { %v793_v30 = vpop.xlane.xlu1 %792  ;;  %v790_v51 = vpop.xlane.xlu0 %789 }
 0x15a   : > { %v3280_v32 = vsel %vm1718_vm5, %v3165_v26, %v793_v30  ;;  %v3284_v23 = vsel %vm1718_vm5, %v3169_v48, %v790_v51  ;;  %v1153_v26 = vsub.f32 %v2925_v58, %v3220_v50  ;;  %v1174_v51 = vand.u32 2147483647, %v1158_v15 }
 0x15c   : > { %1187 = vadd.xlane.f32.xlu1 %v1186_v59  ;;  %1184 = vadd.xlane.f32.xlu0 %v1183_v57  ;;  %v1169_v42 = vand.u32 2147483647, %v1153_v26  ;;  %v1173_v59 = vand.u32 2147483647, %v1157_v5 }
 0x15d   : > { %v799_v63 = vpop.xlane.xlu1 %798  ;;  %v796_v1 = vpop.xlane.xlu0 %795 }
 0x15e   : > { %v3294_v48 = vsel %vm1718_vm5, %v3179_v37, %v799_v63  ;;  %v3298_v43 = vsel %vm1718_vm5, %v3183_v6, %v796_v1  ;;  %v1155_v37 = vsub.f32 %v2945_v61, %v3220_v50  ;;  %v1201_v10 = vsel %vm326_vm0, %v1169_v42, 0.0  ;;  %v3343_v1 = vld [vmem:[%s2311_s5 + $0xb] ss:$0 sm:$0xff] }
 0x15f   : > { %v1232_v44 = vsub.f32 %v2865_v12, %v3343_v1 }
 0x160   : > { %1193 = vadd.xlane.f32.xlu1 %v1192_v45  ;;  %1190 = vadd.xlane.f32.xlu0 %v1189_v18  ;;  %v1171_v13 = vand.u32 2147483647, %v1155_v37  ;;  %v1216_v45 = vsel %vm326_vm0, %v1174_v51, 0.0  ;;  %v1213_v18 = vsel %vm326_vm0, %v1173_v59, 0.0  ;;  %v1235_v59 = vsub.f32 %v2880_v62, %v3343_v1 }
 0x161   : > { %v842_v38 = vpop.xlane.xlu1 %841  ;;  %v839_v55 = vpop.xlane.xlu0 %838 }
 0x162   : > { %v3308_v6 = vsel %vm1735_vm6, %v3193_v34, %v842_v38  ;;  %v3312_v47 = vsel %vm1735_vm6, %v3197_v7, %v839_v55  ;;  %v1172_v34 = vand.u32 2147483647, %v1156_v22  ;;  %v1207_v0 = vsel %vm326_vm0, %v1171_v13, 0.0 }
 0x163   : > { %v1233_v55 = vsub.f32 %v2860_v3, %v3343_v1 }
 0x164   : > { %1199 = vadd.xlane.f32.xlu1 %v1198_v21  ;;  %1196 = vadd.xlane.f32.xlu0 %v1195_v9  ;;  %v1210_v41 = vsel %vm326_vm0, %v1172_v34, 0.0  ;;  %v1176_v21 = vand.u32 2147483647, %v1160_v35  ;;  %v1230_v9 = vsub.f32 %v2843_v56, %v3343_v1 }
 0x165   : > { %v848_v29 = vpop.xlane.xlu1 %847  ;;  %v845_v60 = vpop.xlane.xlu0 %844 }
 0x166   : > { %v3322_v7 = vsel %vm1735_vm6, %v3207_v4, %v848_v29  ;;  %v3326_v30 = vsel %vm1735_vm6, %v3211_v53, %v845_v60  ;;  %v1159_v4 = vsub.f32 %v2985_v31, %v3220_v50  ;;  %v1222_v37 = vsel %vm326_vm0, %v1176_v21, 0.0 }
 0x167   : > { %v1246_v5 = vand.u32 2147483647, %v1230_v9  ;;  %v1249_v60 = vand.u32 2147483647, %v1233_v55  ;;  %v1238_v21 = vsub.f32 %v2925_v58, %v3343_v1 }
 0x168   : > { %1205 = vadd.xlane.f32.xlu1 %v1204_v39  ;;  %1202 = vadd.xlane.f32.xlu0 %v1201_v10  ;;  %v1175_v50 = vand.u32 2147483647, %v1159_v4  ;;  %v1248_v39 = vand.u32 2147483647, %v1232_v44  ;;  %v1251_v4 = vand.u32 2147483647, %v1235_v59 }
 0x169   : > { %v854_v57 = vpop.xlane.xlu1 %853  ;;  %v851_v11 = vpop.xlane.xlu0 %850  ;;  %v1262_v51 = vsel %vm326_vm0, %v1246_v5, 0.0 }
 0x16a   : > { %v3336_v53 = vsel %vm1735_vm6, %v3224_v24, %v854_v57  ;;  %v3340_v63 = vsel %vm1735_vm6, %v3228_v2, %v851_v11  ;;  %v1231_v24 = vsub.f32 %v2838_v25, %v3343_v1  ;;  %v1219_v15 = vsel %vm326_vm0, %v1175_v50, 0.0 }
 0x16b   : > { %v1271_v11 = vsel %vm326_vm0, %v1249_v60, 0.0  ;;  %v1277_v9 = vsel %vm326_vm0, %v1251_v4, 0.0  ;;  %v1244_v4 = vsub.f32 %v2985_v31, %v3343_v1 }
 0x16c   : > { %1211 = vadd.xlane.f32.xlu1 %v1210_v41  ;;  %1208 = vadd.xlane.f32.xlu0 %v1207_v0  ;;  %v1268_v41 = vsel %vm326_vm0, %v1248_v39, 0.0  ;;  %v1241_v39 = vsub.f32 %v2940_v54, %v3343_v1 }
 0x16d   : > { %v860_v33 = vpop.xlane.xlu1 %859  ;;  %v857_v26 = vpop.xlane.xlu0 %856 }
 0x16e   : > { %v3353_v2 = vsel %vm1735_vm6, %v3238_v40, %v860_v33  ;;  %v3357_v38 = vsel %vm1735_vm6, %v3242_v28, %v857_v26  ;;  %v1247_v40 = vand.u32 2147483647, %v1231_v24  ;;  %v1239_v26 = vsub.f32 %v2920_v52, %v3343_v1 }
 0x170   : > { %1217 = vadd.xlane.f32.xlu1 %v1216_v45  ;;  %1214 = vadd.xlane.f32.xlu0 %v1213_v18  ;;  %v1265_v13 = vsel %vm326_vm0, %v1247_v40, 0.0  ;;  %v1237_v18 = vsub.f32 %v2898_v36, %v3343_v1 }
 0x171   : > { %v866_v42 = vpop.xlane.xlu1 %865  ;;  %v863_v22 = vpop.xlane.xlu0 %862 }
 0x172   : > { %v3367_v28 = vsel %vm1735_vm6, %v3252_v49, %v866_v42  ;;  %v3371_v29 = vsel %vm1735_vm6, %v3256_v27, %v863_v22  ;;  %v1234_v49 = vsub.f32 %v2885_v8, %v3343_v1  ;;  %v1255_v22 = vand.u32 2147483647, %v1239_v26 }
 0x174   : > { %1223 = vadd.xlane.f32.xlu1 %v1222_v37  ;;  %1220 = vadd.xlane.f32.xlu0 %v1219_v15  ;;  %v1250_v45 = vand.u32 2147483647, %v1234_v49  ;;  %v1254_v37 = vand.u32 2147483647, %v1238_v21  ;;  %v1257_v49 = vand.u32 2147483647, %v1241_v39 }
 0x175   : > { %v872_v10 = vpop.xlane.xlu1 %871  ;;  %v869_v34 = vpop.xlane.xlu0 %868 }
 0x176   : > { %v3381_v27 = vsel %vm1735_vm6, %v3266_v20, %v872_v10  ;;  %v3385_v57 = vsel %vm1735_vm6, %v3270_v46, %v869_v34  ;;  %v1236_v20 = vsub.f32 %v2903_v19, %v3343_v1  ;;  %v1274_v55 = vsel %vm326_vm0, %v1250_v45, 0.0 }
 0x177   : > { %v1289_v34 = vsel %vm326_vm0, %v1255_v22, 0.0 }
 0x178   : > { %1266 = vadd.xlane.f32.xlu1 %v1265_v13  ;;  %1263 = vadd.xlane.f32.xlu0 %v1262_v51  ;;  %v1252_v44 = vand.u32 2147483647, %v1236_v20  ;;  %v1286_v13 = vsel %vm326_vm0, %v1254_v37, 0.0  ;;  %v1295_v20 = vsel %vm326_vm0, %v1257_v49, 0.0 }
 0x179   : > { %v878_v0 = vpop.xlane.xlu1 %877  ;;  %v875_v35 = vpop.xlane.xlu0 %874 }
 0x17a   : > { %v3395_v46 = vsel %vm1735_vm6, %v3280_v32, %v878_v0  ;;  %v3399_v33 = vsel %vm1735_vm6, %v3284_v23, %v875_v35  ;;  %v1253_v32 = vand.u32 2147483647, %v1237_v18  ;;  %v1280_v60 = vsel %vm326_vm0, %v1252_v44, 0.0 }
 0x17b   : > { %v1245_v35 = vsub.f32 %v2980_v17, %v3343_v1 }
 0x17c   : > { %1272 = vadd.xlane.f32.xlu1 %v1271_v11  ;;  %1269 = vadd.xlane.f32.xlu0 %v1268_v41  ;;  %v1283_v5 = vsel %vm326_vm0, %v1253_v32, 0.0  ;;  %v1243_v41 = vsub.f32 %v2958_v16, %v3343_v1 }
 0x17d   : > { %v884_v50 = vpop.xlane.xlu1 %883  ;;  %v881_v24 = vpop.xlane.xlu0 %880 }
 0x17e   : > { %v3409_v23 = vsel %vm1735_vm6, %v3294_v48, %v884_v50  ;;  %v3413_v42 = vsel %vm1735_vm6, %v3298_v43, %v881_v24  ;;  %v1240_v48 = vsub.f32 %v2945_v61, %v3343_v1  ;;  %v3458_v24 = vld [vmem:[%s2311_s5 + $0xc] ss:$0 sm:$0xff] }
 0x17f   : > { %v1315_v37 = vsub.f32 %v2843_v56, %v3458_v24  ;;  %v1318_v56 = vsub.f32 %v2860_v3, %v3458_v24 }
 0x180   : > { %1278 = vadd.xlane.f32.xlu1 %v1277_v9  ;;  %1275 = vadd.xlane.f32.xlu0 %v1274_v55  ;;  %v1256_v11 = vand.u32 2147483647, %v1240_v48  ;;  %v1260_v9 = vand.u32 2147483647, %v1244_v4 }
 0x181   : > { %v927_v15 = vpop.xlane.xlu1 %926  ;;  %v924_v40 = vpop.xlane.xlu0 %923  ;;  %v1331_v48 = vand.u32 2147483647, %v1315_v37 }
 0x182   : > { %v3423_v43 = vsel %vm1752_vm7, %v3308_v6, %v927_v15  ;;  %v3427_v10 = vsel %vm1752_vm7, %v3312_v47, %v924_v40  ;;  %v1242_v6 = vsub.f32 %v2963_v14, %v3343_v1  ;;  %v1292_v26 = vsel %vm326_vm0, %v1256_v11, 0.0 }
 0x183   : > { %v1261_v1 = vand.u32 2147483647, %v1245_v35  ;;  %v1347_v49 = vsel %vm326_vm0, %v1331_v48, 0.0  ;;  %v1328_v48 = vsub.f32 %v2958_v16, %v3458_v24 }
 0x184   : > { %1284 = vadd.xlane.f32.xlu1 %v1283_v5  ;;  %1281 = vadd.xlane.f32.xlu0 %v1280_v60  ;;  %v1258_v21 = vand.u32 2147483647, %v1242_v6  ;;  %v1304_v5 = vsel %vm326_vm0, %v1260_v9, 0.0 }
 0x185   : > { %v933_v51 = vpop.xlane.xlu1 %932  ;;  %v930_v59 = vpop.xlane.xlu0 %929  ;;  %v1307_v40 = vsel %vm326_vm0, %v1261_v1, 0.0 }
 0x186   : > { %v3437_v47 = vsel %vm1752_vm7, %v3322_v7, %v933_v51  ;;  %v3441_v0 = vsel %vm1752_vm7, %v3326_v30, %v930_v59  ;;  %v1259_v7 = vand.u32 2147483647, %v1243_v41  ;;  %v1298_v22 = vsel %vm326_vm0, %v1258_v21, 0.0 }
 0x187   : > { %v1319_v51 = vsub.f32 %v2885_v8, %v3458_v24 }
 0x188   : > { %1290 = vadd.xlane.f32.xlu1 %v1289_v34  ;;  %1287 = vadd.xlane.f32.xlu0 %v1286_v13  ;;  %v1301_v44 = vsel %vm326_vm0, %v1259_v7, 0.0  ;;  %v1320_v13 = vsub.f32 %v2880_v62, %v3458_v24 }
 0x189   : > { %v939_v45 = vpop.xlane.xlu1 %938  ;;  %v936_v18 = vpop.xlane.xlu0 %935  ;;  %v1335_v8 = vand.u32 2147483647, %v1319_v51 }
 0x18a   : > { %v3451_v30 = vsel %vm1752_vm7, %v3336_v53, %v939_v45  ;;  %v3455_v50 = vsel %vm1752_vm7, %v3340_v63, %v936_v18  ;;  %v1316_v53 = vsub.f32 %v2838_v25, %v3458_v24  ;;  %v1336_v62 = vand.u32 2147483647, %v1320_v13 }
 0x18b   : > { %v1322_v18 = vsub.f32 %v2898_v36, %v3458_v24  ;;  %v1359_v7 = vsel %vm326_vm0, %v1335_v8, 0.0 }
 0x18c   : > { %1296 = vadd.xlane.f32.xlu1 %v1295_v20  ;;  %1293 = vadd.xlane.f32.xlu0 %v1292_v26  ;;  %v1332_v25 = vand.u32 2147483647, %v1316_v53  ;;  %v1362_v26 = vsel %vm326_vm0, %v1336_v62, 0.0 }
 0x18d   : > { %v945_v55 = vpop.xlane.xlu1 %944  ;;  %v942_v32 = vpop.xlane.xlu0 %941  ;;  %v1338_v36 = vand.u32 2147483647, %v1322_v18 }
 0x18e   : > { %v3468_v63 = vsel %vm1752_vm7, %v3353_v2, %v945_v55  ;;  %v3472_v15 = vsel %vm1752_vm7, %v3357_v38, %v942_v32  ;;  %v1317_v2 = vsub.f32 %v2865_v12, %v3458_v24  ;;  %v1350_v12 = vsel %vm326_vm0, %v1332_v25, 0.0 }
 0x18f   : > { %v1326_v32 = vsub.f32 %v2940_v54, %v3458_v24 }
 0x190   : > { %1302 = vadd.xlane.f32.xlu1 %v1301_v44  ;;  %1299 = vadd.xlane.f32.xlu0 %v1298_v22  ;;  %v1333_v11 = vand.u32 2147483647, %v1317_v2 }
 0x191   : > { %v951_v60 = vpop.xlane.xlu1 %950  ;;  %v948_v39 = vpop.xlane.xlu0 %947  ;;  %v1342_v54 = vand.u32 2147483647, %v1326_v32 }
 0x192   : > { %v3482_v38 = vsel %vm1752_vm7, %v3367_v28, %v951_v60  ;;  %v3486_v34 = vsel %vm1752_vm7, %v3371_v29, %v948_v39  ;;  %v1334_v28 = vand.u32 2147483647, %v1318_v56  ;;  %v1353_v45 = vsel %vm326_vm0, %v1333_v11, 0.0  ;;  %v3581_v11 = vld [vmem:[%s2306_s27] sm:$0xff] }
 0x193   : > { %v1380_v2 = vsel %vm326_vm0, %v1342_v54, 0.0 }
 0x194   : > { %1308 = vadd.xlane.f32.xlu1 %v1307_v40  ;;  %1305 = vadd.xlane.f32.xlu0 %v1304_v5  ;;  %v1356_v4 = vsel %vm326_vm0, %v1334_v28, 0.0  ;;  %v3576_v28 = vld [vmem:[%s2306_s27 + $0x8] sm:$0xff] }
 0x195   : > { %v957_v3 = vpop.xlane.xlu1 %956  ;;  %v954_v59 = vpop.xlane.xlu0 %953 }
 0x196   : > { %v3496_v29 = vsel %vm1752_vm7, %v3381_v27, %v957_v3  ;;  %v3500_v41 = vsel %vm1752_vm7, %v3385_v57, %v954_v59  ;;  %v1321_v27 = vsub.f32 %v2903_v19, %v3458_v24  ;;  %v1324_v19 = vsub.f32 %v2920_v52, %v3458_v24 }
 0x197   : > { %v1325_v52 = vsub.f32 %v2945_v61, %v3458_v24  ;;  %v1344_v3 = vand.u32 2147483647, %v1328_v48  ;;  %v1329_v59 = vsub.f32 %v2985_v31, %v3458_v24 }
 0x198   : > { %1351 = vadd.xlane.f32.xlu1 %v1350_v12  ;;  %1348 = vadd.xlane.f32.xlu0 %v1347_v49  ;;  %v1337_v9 = vand.u32 2147483647, %v1321_v27  ;;  %v1340_v53 = vand.u32 2147483647, %v1324_v19 }
 0x199   : > { %v963_v6 = vpop.xlane.xlu1 %962  ;;  %v960_v35 = vpop.xlane.xlu0 %959  ;;  %v1341_v61 = vand.u32 2147483647, %v1325_v52  ;;  %v1386_v62 = vsel %vm326_vm0, %v1344_v3, 0.0 }
 0x19a   : > { %v3510_v57 = vsel %vm1752_vm7, %v3395_v46, %v963_v6  ;;  %v3514_v20 = vsel %vm1752_vm7, %v3399_v33, %v960_v35  ;;  %v1323_v46 = vsub.f32 %v2925_v58, %v3458_v24  ;;  %v1368_v58 = vsel %vm326_vm0, %v1338_v36, 0.0  ;;  %v3603_v36 = vld [vmem:[%s2306_s27 + $0x10] sm:$0xff] }
 0x19b   : > { %v1374_v39 = vsel %vm326_vm0, %v1340_v53, 0.0  ;;  %v1377_v13 = vsel %vm326_vm0, %v1341_v61, 0.0  ;;  %v1345_v6 = vand.u32 2147483647, %v1329_v59  ;;  %v3623_v53 = vld [vmem:[%s2306_s27 + $0x20] sm:$0xff]  ;;  %v3636_v61 = vld [vmem:[%s2306_s27 + $0x38] sm:$0xff] }
 0x19c   : > { %1357 = vadd.xlane.f32.xlu1 %v1356_v4  ;;  %1354 = vadd.xlane.f32.xlu0 %v1353_v45  ;;  %v1339_v37 = vand.u32 2147483647, %v1323_v46 }
 0x19d   : > { %v969_v21 = vpop.xlane.xlu1 %968  ;;  %v966_v1 = vpop.xlane.xlu0 %965 }
 0x19e   : > { %v3524_v33 = vsel %vm1752_vm7, %v3409_v23, %v969_v21  ;;  %v3528_v55 = vsel %vm1752_vm7, %v3413_v42, %v966_v1  ;;  %v1365_v23 = vsel %vm326_vm0, %v1337_v9, 0.0  ;;  %v1371_v25 = vsel %vm326_vm0, %v1339_v37, 0.0  ;;  %v3598_v1 = vld [vmem:[%s2306_s27 + $0x18] sm:$0xff] }
 0x19f   : > { %v1389_v21 = vsel %vm326_vm0, %v1345_v6, 0.0 }
 0x1a0   : > { %1363 = vadd.xlane.f32.xlu1 %v1362_v26  ;;  %1360 = vadd.xlane.f32.xlu0 %v1359_v7 }
 0x1a1   : > { %v1012_v44 = vpop.xlane.xlu1 %1011  ;;  %v1009_v22 = vpop.xlane.xlu0 %1008 }
 0x1a2   : > { %v3538_v42 = vsel %vm1769_vm8, %v3423_v43, %v1012_v44  ;;  %v3542_v40 = vsel %vm1769_vm8, %v3427_v10, %v1009_v22  ;;  %v1327_v43 = vsub.f32 %v2963_v14, %v3458_v24 }
 0x1a4   : > { %1369 = vadd.xlane.f32.xlu1 %v1368_v58  ;;  %1366 = vadd.xlane.f32.xlu0 %v1365_v23  ;;  %v1343_v14 = vand.u32 2147483647, %v1327_v43  ;;  %v3618_v23 = vld [vmem:[%s2306_s27 + $0x28] sm:$0xff] }
 0x1a5   : > { %v1018_v5 = vpop.xlane.xlu1 %1017  ;;  %v1015_v60 = vpop.xlane.xlu0 %1014 }
 0x1a6   : > { %v3552_v10 = vsel %vm1769_vm8, %v3437_v47, %v1018_v5  ;;  %v3556_v56 = vsel %vm1769_vm8, %v3441_v0, %v1015_v60  ;;  %v1330_v47 = vsub.f32 %v2980_v17, %v3458_v24  ;;  %v3565_v0 = vld [vmem:[%s2311_s5 + $0xd] ss:$0 sm:$0xff]  ;;  %v3641_v60 = vld [vmem:[%s2306_s27 + $0x30] sm:$0xff] }
 0x1a7   : > { %v1401_v17 = vsub.f32 %v3576_v28, %v3565_v0  ;;  %v1400_v31 = vsub.f32 %v3581_v11, %v3565_v0  ;;  %v1407_v5 = vsub.f32 %v3636_v61, %v3565_v0 }
 0x1a8   : > { %1375 = vadd.xlane.f32.xlu1 %v1374_v39  ;;  %1372 = vadd.xlane.f32.xlu0 %v1371_v25  ;;  %v1346_v8 = vand.u32 2147483647, %v1330_v47  ;;  %v1406_v39 = vsub.f32 %v3641_v60, %v3565_v0 }
 0x1a9   : > { %v1024_v16 = vpop.xlane.xlu1 %1023  ;;  %v1021_v51 = vpop.xlane.xlu0 %1020  ;;  %v1417_v45 = vand.u32 2147483647, %v1401_v17  ;;  %v1416_v18 = vand.u32 2147483647, %v1400_v31  ;;  %v3658_v31 = vld [vmem:[%s2306_s27 + $0x48] sm:$0xff] }
 0x1aa   : > { %v3569_v12 = vsel %vm1769_vm8, %v3451_v30, %v1024_v16  ;;  %v3573_v49 = vsel %vm1769_vm8, %v3455_v50, %v1021_v51  ;;  %v1383_v50 = vsel %vm326_vm0, %v1343_v14, 0.0  ;;  %v1392_v7 = vsel %vm326_vm0, %v1346_v8, 0.0 }
 0x1ab   : > { %v1435_v46 = vsel %vm326_vm0, %v1417_v45, 0.0  ;;  %v1432_v32 = vsel %vm326_vm0, %v1416_v18, 0.0  ;;  %v1423_v51 = vand.u32 2147483647, %v1407_v5  ;;  %v1422_v3 = vand.u32 2147483647, %v1406_v39 }
 0x1ac   : > { %1381 = vadd.xlane.f32.xlu1 %v1380_v2  ;;  %1378 = vadd.xlane.f32.xlu0 %v1377_v13 }
 0x1ad   : > { %v1030_v24 = vpop.xlane.xlu1 %1029  ;;  %v1027_v30 = vpop.xlane.xlu0 %1026  ;;  %v1450_v8 = vsel %vm326_vm0, %v1422_v3, 0.0 }
 0x1ae   : > { %v3589_v35 = vsel %vm1769_vm8, %v3468_v63, %v1030_v24  ;;  %v3593_v4 = vsel %vm1769_vm8, %v3472_v15, %v1027_v30  ;;  %v1403_v63 = vsub.f32 %v3598_v1, %v3565_v0  ;;  %v1402_v15 = vsub.f32 %v3603_v36, %v3565_v0  ;;  %v3663_v24 = vld [vmem:[%s2306_s27 + $0x40] sm:$0xff] }
 0x1b0   : > { %1387 = vadd.xlane.f32.xlu1 %v1386_v62  ;;  %1384 = vadd.xlane.f32.xlu0 %v1383_v50  ;;  %v1419_v22 = vand.u32 2147483647, %v1403_v63  ;;  %v1418_v58 = vand.u32 2147483647, %v1402_v15  ;;  %v1453_v50 = vsel %vm326_vm0, %v1423_v51, 0.0  ;;  %v3696_v15 = vld [vmem:[%s2306_s27 + $0x68] sm:$0xff] }
 0x1b1   : > { %v1036_v27 = vpop.xlane.xlu1 %1035  ;;  %v1033_v26 = vpop.xlane.xlu0 %1032  ;;  %v3723_v51 = vld [vmem:[%s2306_s27 + $0x70] sm:$0xff] }
 0x1b2   : > { %v3609_v9 = vsel %vm1769_vm8, %v3482_v38, %v1036_v27  ;;  %v3613_v19 = vsel %vm1769_vm8, %v3486_v34, %v1033_v26  ;;  %v1405_v38 = vsub.f32 %v3618_v23, %v3565_v0  ;;  %v1404_v34 = vsub.f32 %v3623_v53, %v3565_v0  ;;  %v3678_v26 = vld [vmem:[%s2306_s27 + $0x58] sm:$0xff] }
 0x1b3   : > { %v1441_v48 = vsel %vm326_vm0, %v1419_v22, 0.0 }
 0x1b4   : > { %1393 = vadd.xlane.f32.xlu1 %v1392_v7  ;;  %1390 = vadd.xlane.f32.xlu0 %v1389_v21  ;;  %v1421_v43 = vand.u32 2147483647, %v1405_v38  ;;  %v1420_v2 = vand.u32 2147483647, %v1404_v34 }
 0x1b5   : > { %v1042_v52 = vpop.xlane.xlu1 %1041  ;;  %v1039_v44 = vpop.xlane.xlu0 %1038 }
 0x1b6   : > { %v3629_v37 = vsel %vm1769_vm8, %v3496_v29, %v1042_v52  ;;  %v3633_v54 = vsel %vm1769_vm8, %v3500_v41, %v1039_v44  ;;  %v1438_v41 = vsel %vm326_vm0, %v1418_v58, 0.0  ;;  %v1447_v59 = vsel %vm326_vm0, %v1421_v43, 0.0 }
 0x1b7   : > { %v1444_v17 = vsel %vm326_vm0, %v1420_v2, 0.0  ;;  %v3718_v2 = vld [vmem:[%s2306_s27 + $0x78] sm:$0xff] }
 0x1b8   : > { %1436 = vadd.xlane.f32.xlu1 %v1435_v46  ;;  %1433 = vadd.xlane.f32.xlu0 %v1432_v32  ;;  %v1413_v46 = vsub.f32 %v3696_v15, %v3565_v0  ;;  %v3701_v32 = vld [vmem:[%s2306_s27 + $0x60] sm:$0xff] }
 0x1b9   : > { %v1048_v25 = vpop.xlane.xlu1 %1047  ;;  %v1045_v29 = vpop.xlane.xlu0 %1044  ;;  %v1412_v52 = vsub.f32 %v3701_v32, %v3565_v0 }
 0x1ba   : > { %v3649_v13 = vsel %vm1769_vm8, %v3510_v57, %v1048_v25  ;;  %v3653_v16 = vsel %vm1769_vm8, %v3514_v20, %v1045_v29  ;;  %v1409_v57 = vsub.f32 %v3658_v31, %v3565_v0  ;;  %v1408_v20 = vsub.f32 %v3663_v24, %v3565_v0 }
 0x1bb   : > { %v1429_v39 = vand.u32 2147483647, %v1413_v46  ;;  %v1428_v25 = vand.u32 2147483647, %v1412_v52 }
 0x1bc   : > { %1442 = vadd.xlane.f32.xlu1 %v1441_v48  ;;  %1439 = vadd.xlane.f32.xlu0 %v1438_v41  ;;  %v1425_v18 = vand.u32 2147483647, %v1409_v57  ;;  %v1424_v27 = vand.u32 2147483647, %v1408_v20 }
 0x1bd   : > { %v1054_v14 = vpop.xlane.xlu1 %1053  ;;  %v1051_v47 = vpop.xlane.xlu0 %1050 }
 0x1be   : > { %v3669_v30 = vsel %vm1769_vm8, %v3524_v33, %v1054_v14  ;;  %v3673_v62 = vsel %vm1769_vm8, %v3528_v55, %v1051_v47  ;;  %v1411_v33 = vsub.f32 %v3678_v26, %v3565_v0  ;;  %v3683_v55 = vld [vmem:[%s2306_s27 + $0x50] sm:$0xff]  ;;  %v1459_v22 = vsel %vm326_vm0, %v1425_v18, 0.0  ;;  %v3736_v47 = vld [vmem:[%s2311_s5 + $0xe] ss:$0 sm:$0xff] }
 0x1bf   : > { %v1410_v7 = vsub.f32 %v3683_v55, %v3565_v0  ;;  %v1487_v18 = vsub.f32 %v3603_v36, %v3736_v47 }
 0x1c0   : > { %1448 = vadd.xlane.f32.xlu1 %v1447_v59  ;;  %1445 = vadd.xlane.f32.xlu0 %v1444_v17  ;;  %v1427_v58 = vand.u32 2147483647, %v1411_v33  ;;  %v1471_v59 = vsel %vm326_vm0, %v1429_v39, 0.0  ;;  %v1468_v17 = vsel %vm326_vm0, %v1428_v25, 0.0  ;;  %v1490_v25 = vsub.f32 %v3618_v23, %v3736_v47 }
 0x1c1   : > { %v1097_v6 = vpop.xlane.xlu1 %1096  ;;  %v1094_v45 = vpop.xlane.xlu0 %1093  ;;  %v1426_v38 = vand.u32 2147483647, %v1410_v7 }
 0x1c2   : > { %v3689_v21 = vsel %vm1786_vm9, %v3538_v42, %v1097_v6  ;;  %v3693_v63 = vsel %vm1786_vm9, %v3542_v40, %v1094_v45  ;;  %v1456_v40 = vsel %vm326_vm0, %v1424_v27, 0.0  ;;  %v1465_v41 = vsel %vm326_vm0, %v1427_v58, 0.0 }
 0x1c3   : > { %v1462_v43 = vsel %vm326_vm0, %v1426_v38, 0.0  ;;  %v1488_v45 = vsub.f32 %v3598_v1, %v3736_v47 }
 0x1c4   : > { %1454 = vadd.xlane.f32.xlu1 %v1453_v50  ;;  %1451 = vadd.xlane.f32.xlu0 %v1450_v8  ;;  %v1485_v8 = vsub.f32 %v3581_v11, %v3736_v47 }
 0x1c5   : > { %v1103_v44 = vpop.xlane.xlu1 %1102  ;;  %v1100_v42 = vpop.xlane.xlu0 %1099 }
 0x1c6   : > { %v3709_v34 = vsel %vm1786_vm9, %v3552_v10, %v1103_v44  ;;  %v3713_v5 = vsel %vm1786_vm9, %v3556_v56, %v1100_v42  ;;  %v1415_v10 = vsub.f32 %v3718_v2, %v3565_v0  ;;  %v1414_v56 = vsub.f32 %v3723_v51, %v3565_v0 }
 0x1c7   : > { %v1501_v52 = vand.u32 2147483647, %v1485_v8  ;;  %v1504_v42 = vand.u32 2147483647, %v1488_v45 }
 0x1c8   : > { %1460 = vadd.xlane.f32.xlu1 %v1459_v22  ;;  %1457 = vadd.xlane.f32.xlu0 %v1456_v40  ;;  %v1431_v50 = vand.u32 2147483647, %v1415_v10  ;;  %v1430_v0 = vand.u32 2147483647, %v1414_v56  ;;  %v1503_v22 = vand.u32 2147483647, %v1487_v18 }
 0x1c9   : > { %v1109_v29 = vpop.xlane.xlu1 %1108  ;;  %v1106_v48 = vpop.xlane.xlu0 %1105  ;;  %v1517_v39 = vsel %vm326_vm0, %v1501_v52, 0.0  ;;  %v1506_v56 = vand.u32 2147483647, %v1490_v25 }
 0x1ca   : > { %v3729_v3 = vsel %vm1786_vm9, %v3569_v12, %v1109_v29  ;;  %v3733_v14 = vsel %vm1786_vm9, %v3573_v49, %v1106_v48  ;;  %v1486_v12 = vsub.f32 %v3576_v28, %v3736_v47  ;;  %v1477_v7 = vsel %vm326_vm0, %v1431_v50, 0.0 }
 0x1cb   : > { %v1474_v46 = vsel %vm326_vm0, %v1430_v0, 0.0  ;;  %v1526_v48 = vsel %vm326_vm0, %v1504_v42, 0.0  ;;  %v1493_v50 = vsub.f32 %v3663_v24, %v3736_v47  ;;  %v1532_v8 = vsel %vm326_vm0, %v1506_v56, 0.0 }
 0x1cc   : > { %1466 = vadd.xlane.f32.xlu1 %v1465_v41  ;;  %1463 = vadd.xlane.f32.xlu0 %v1462_v43  ;;  %v1523_v41 = vsel %vm326_vm0, %v1503_v22, 0.0  ;;  %v1496_v22 = vsub.f32 %v3678_v26, %v3736_v47  ;;  %v1499_v56 = vsub.f32 %v3723_v51, %v3736_v47 }
 0x1cd   : > { %v1115_v57 = vpop.xlane.xlu1 %1114  ;;  %v1112_v20 = vpop.xlane.xlu0 %1111 }
 0x1ce   : > { %v3746_v49 = vsel %vm1786_vm9, %v3589_v35, %v1115_v57  ;;  %v3750_v6 = vsel %vm1786_vm9, %v3593_v4, %v1112_v20  ;;  %v1502_v35 = vand.u32 2147483647, %v1486_v12  ;;  %v1494_v20 = vsub.f32 %v3658_v31, %v3736_v47 }
 0x1d0   : > { %1472 = vadd.xlane.f32.xlu1 %v1471_v59  ;;  %1469 = vadd.xlane.f32.xlu0 %v1468_v17  ;;  %v1520_v38 = vsel %vm326_vm0, %v1502_v35, 0.0  ;;  %v1492_v17 = vsub.f32 %v3636_v61, %v3736_v47 }
 0x1d1   : > { %v1121_v27 = vpop.xlane.xlu1 %1120  ;;  %v1118_v33 = vpop.xlane.xlu0 %1117 }
 0x1d2   : > { %v3760_v4 = vsel %vm1786_vm9, %v3609_v9, %v1121_v27  ;;  %v3764_v44 = vsel %vm1786_vm9, %v3613_v19, %v1118_v33  ;;  %v1489_v9 = vsub.f32 %v3623_v53, %v3736_v47  ;;  %v1510_v33 = vand.u32 2147483647, %v1494_v20 }
 0x1d4   : > { %1478 = vadd.xlane.f32.xlu1 %v1477_v7  ;;  %1475 = vadd.xlane.f32.xlu0 %v1474_v46  ;;  %v1505_v59 = vand.u32 2147483647, %v1489_v9  ;;  %v1509_v7 = vand.u32 2147483647, %v1493_v50  ;;  %v1512_v9 = vand.u32 2147483647, %v1496_v22 }
 0x1d5   : > { %v1127_v40 = vpop.xlane.xlu1 %1126  ;;  %v1124_v58 = vpop.xlane.xlu0 %1123 }
 0x1d6   : > { %v3774_v19 = vsel %vm1786_vm9, %v3629_v37, %v1127_v40  ;;  %v3778_v29 = vsel %vm1786_vm9, %v3633_v54, %v1124_v58  ;;  %v1491_v37 = vsub.f32 %v3641_v60, %v3736_v47  ;;  %v1529_v45 = vsel %vm326_vm0, %v1505_v59, 0.0 }
 0x1d7   : > { %v1544_v58 = vsel %vm326_vm0, %v1510_v33, 0.0 }
 0x1d8   : > { %1521 = vadd.xlane.f32.xlu1 %v1520_v38  ;;  %1518 = vadd.xlane.f32.xlu0 %v1517_v39  ;;  %v1507_v18 = vand.u32 2147483647, %v1491_v37  ;;  %v1541_v38 = vsel %vm326_vm0, %v1509_v7, 0.0  ;;  %v1550_v37 = vsel %vm326_vm0, %v1512_v9, 0.0 }
 0x1d9   : > { %v1133_v43 = vpop.xlane.xlu1 %1132  ;;  %v1130_v10 = vpop.xlane.xlu0 %1129 }
 0x1da   : > { %v3788_v54 = vsel %vm1786_vm9, %v3649_v13, %v1133_v43  ;;  %v3792_v57 = vsel %vm1786_vm9, %v3653_v16, %v1130_v10  ;;  %v1508_v13 = vand.u32 2147483647, %v1492_v17  ;;  %v1535_v42 = vsel %vm326_vm0, %v1507_v18, 0.0 }
 0x1db   : > { %v1500_v10 = vsub.f32 %v3718_v2, %v3736_v47 }
 0x1dc   : > { %1527 = vadd.xlane.f32.xlu1 %v1526_v48  ;;  %1524 = vadd.xlane.f32.xlu0 %v1523_v41  ;;  %v1538_v52 = vsel %vm326_vm0, %v1508_v13, 0.0  ;;  %v1498_v41 = vsub.f32 %v3696_v15, %v3736_v47 }
 0x1dd   : > { %v1139_v0 = vpop.xlane.xlu1 %1138  ;;  %v1136_v12 = vpop.xlane.xlu0 %1135 }
 0x1de   : > { %v3802_v16 = vsel %vm1786_vm9, %v3669_v30, %v1139_v0  ;;  %v3806_v27 = vsel %vm1786_vm9, %v3673_v62, %v1136_v12  ;;  %v1495_v30 = vsub.f32 %v3683_v55, %v3736_v47  ;;  %v3851_v12 = vld [vmem:[%s2311_s5 + $0xf] ss:$0 sm:$0xff] }
 0x1df   : > { %v1570_v7 = vsub.f32 %v3581_v11, %v3851_v12  ;;  %v1573_v11 = vsub.f32 %v3598_v1, %v3851_v12 }
 0x1e0   : > { %1533 = vadd.xlane.f32.xlu1 %v1532_v8  ;;  %1530 = vadd.xlane.f32.xlu0 %v1529_v45  ;;  %v1511_v48 = vand.u32 2147483647, %v1495_v30  ;;  %v1515_v8 = vand.u32 2147483647, %v1499_v56 }
 0x1e1   : > { %v1182_v46 = vpop.xlane.xlu1 %1181  ;;  %v1179_v35 = vpop.xlane.xlu0 %1178  ;;  %v1586_v30 = vand.u32 2147483647, %v1570_v7 }
 0x1e2   : > { %v3816_v62 = vsel %vm1803_vm10, %v3689_v21, %v1182_v46  ;;  %v3820_v40 = vsel %vm1803_vm10, %v3693_v63, %v1179_v35  ;;  %v1497_v21 = vsub.f32 %v3701_v32, %v3736_v47  ;;  %v1547_v20 = vsel %vm326_vm0, %v1511_v48, 0.0 }
 0x1e3   : > { %v1516_v47 = vand.u32 2147483647, %v1500_v10  ;;  %v1602_v9 = vsel %vm326_vm0, %v1586_v30, 0.0  ;;  %v1583_v30 = vsub.f32 %v3696_v15, %v3851_v12  ;;  %v1585_v15 = vsub.f32 %v3718_v2, %v3851_v12 }
 0x1e4   : > { %1539 = vadd.xlane.f32.xlu1 %v1538_v52  ;;  %1536 = vadd.xlane.f32.xlu0 %v1535_v42  ;;  %v1513_v50 = vand.u32 2147483647, %v1497_v21  ;;  %v1559_v52 = vsel %vm326_vm0, %v1515_v8, 0.0 }
 0x1e5   : > { %v1188_v39 = vpop.xlane.xlu1 %1187  ;;  %v1185_v25 = vpop.xlane.xlu0 %1184  ;;  %v1562_v35 = vsel %vm326_vm0, %v1516_v47, 0.0 }
 0x1e6   : > { %v3830_v63 = vsel %vm1803_vm10, %v3709_v34, %v1188_v39  ;;  %v3834_v43 = vsel %vm1803_vm10, %v3713_v5, %v1185_v25  ;;  %v1514_v34 = vand.u32 2147483647, %v1498_v41  ;;  %v1553_v33 = vsel %vm326_vm0, %v1513_v50, 0.0 }
 0x1e7   : > { %v1574_v39 = vsub.f32 %v3623_v53, %v3851_v12 }
 0x1e8   : > { %1545 = vadd.xlane.f32.xlu1 %v1544_v58  ;;  %1542 = vadd.xlane.f32.xlu0 %v1541_v38  ;;  %v1556_v18 = vsel %vm326_vm0, %v1514_v34, 0.0  ;;  %v1575_v38 = vsub.f32 %v3618_v23, %v3851_v12 }
 0x1e9   : > { %v1194_v59 = vpop.xlane.xlu1 %1193  ;;  %v1191_v17 = vpop.xlane.xlu0 %1190  ;;  %v1590_v53 = vand.u32 2147483647, %v1574_v39 }
 0x1ea   : > { %v3844_v5 = vsel %vm1803_vm10, %v3729_v3, %v1194_v59  ;;  %v3848_v0 = vsel %vm1803_vm10, %v3733_v14, %v1191_v17  ;;  %v1571_v3 = vsub.f32 %v3576_v28, %v3851_v12  ;;  %v1591_v23 = vand.u32 2147483647, %v1575_v38 }
 0x1eb   : > { %v1577_v17 = vsub.f32 %v3636_v61, %v3851_v12  ;;  %v1614_v34 = vsel %vm326_vm0, %v1590_v53, 0.0  ;;  %v1601_v53 = vand.u32 2147483647, %v1585_v15 }
 0x1ec   : > { %1551 = vadd.xlane.f32.xlu1 %v1550_v37  ;;  %1548 = vadd.xlane.f32.xlu0 %v1547_v20  ;;  %v1587_v28 = vand.u32 2147483647, %v1571_v3  ;;  %v1617_v20 = vsel %vm326_vm0, %v1591_v23, 0.0 }
 0x1ed   : > { %v1200_v45 = vpop.xlane.xlu1 %1199  ;;  %v1197_v13 = vpop.xlane.xlu0 %1196  ;;  %v1593_v61 = vand.u32 2147483647, %v1577_v17 }
 0x1ee   : > { %v3861_v14 = vsel %vm1803_vm10, %v3746_v49, %v1200_v45  ;;  %v3865_v46 = vsel %vm1803_vm10, %v3750_v6, %v1197_v13  ;;  %v1572_v49 = vsub.f32 %v3603_v36, %v3851_v12  ;;  %v1605_v36 = vsel %vm326_vm0, %v1587_v28, 0.0 }
 0x1ef   : > { %v1581_v13 = vsub.f32 %v3678_v26, %v3851_v12 }
 0x1f0   : > { %1557 = vadd.xlane.f32.xlu1 %v1556_v18  ;;  %1554 = vadd.xlane.f32.xlu0 %v1553_v33  ;;  %v1588_v48 = vand.u32 2147483647, %v1572_v49 }
 0x1f1   : > { %v1206_v42 = vpop.xlane.xlu1 %1205  ;;  %v1203_v22 = vpop.xlane.xlu0 %1202  ;;  %v1597_v26 = vand.u32 2147483647, %v1581_v13 }
 0x1f2   : > { %v3875_v6 = vsel %vm1803_vm10, %v3760_v4, %v1206_v42  ;;  %v3879_v58 = vsel %vm1803_vm10, %v3764_v44, %v1203_v22  ;;  %v1589_v4 = vand.u32 2147483647, %v1573_v11  ;;  %v1608_v59 = vsel %vm326_vm0, %v1588_v48, 0.0 }
 0x1f3   : > { %v1582_v11 = vsub.f32 %v3701_v32, %v3851_v12  ;;  %v1635_v49 = vsel %vm326_vm0, %v1597_v26, 0.0  ;;  %v1584_v32 = vsub.f32 %v3723_v51, %v3851_v12 }
 0x1f4   : > { %1563 = vadd.xlane.f32.xlu1 %v1562_v35  ;;  %1560 = vadd.xlane.f32.xlu0 %v1559_v52  ;;  %v1611_v56 = vsel %vm326_vm0, %v1589_v4, 0.0 }
 0x1f5   : > { %v1212_v1 = vpop.xlane.xlu1 %1211  ;;  %v1209_v25 = vpop.xlane.xlu0 %1208 }
 0x1f6   : > { %v3889_v44 = vsel %vm1803_vm10, %v3774_v19, %v1212_v1  ;;  %v3893_v41 = vsel %vm1803_vm10, %v3778_v29, %v1209_v25  ;;  %v1576_v19 = vsub.f32 %v3641_v60, %v3851_v12  ;;  %v1579_v60 = vsub.f32 %v3658_v31, %v3851_v12 }
 0x1f7   : > { %v1580_v31 = vsub.f32 %v3683_v55, %v3851_v12  ;;  %v1599_v25 = vand.u32 2147483647, %v1583_v30 }
 0x1f8   : > { %1606 = vadd.xlane.f32.xlu1 %v1605_v36  ;;  %1603 = vadd.xlane.f32.xlu0 %v1602_v9  ;;  %v1592_v8 = vand.u32 2147483647, %v1576_v19  ;;  %v1595_v3 = vand.u32 2147483647, %v1579_v60  ;;  %v1598_v36 = vand.u32 2147483647, %v1582_v11 }
 0x1f9   : > { %v1218_v21 = vpop.xlane.xlu1 %1217  ;;  %v1215_v10 = vpop.xlane.xlu0 %1214  ;;  %v1596_v52 = vand.u32 2147483647, %v1580_v31  ;;  %v1641_v48 = vsel %vm326_vm0, %v1599_v25, 0.0 }
 0x1fa   : > { %v3903_v29 = vsel %vm1803_vm10, %v3788_v54, %v1218_v21  ;;  %v3907_v37 = vsel %vm1803_vm10, %v3792_v57, %v1215_v10  ;;  %v1578_v54 = vsub.f32 %v3663_v24, %v3851_v12  ;;  %v1623_v24 = vsel %vm326_vm0, %v1593_v61, 0.0 }
 0x1fb   : > { %v1629_v22 = vsel %vm326_vm0, %v1595_v3, 0.0  ;;  %v1632_v38 = vsel %vm326_vm0, %v1596_v52, 0.0  ;;  %v1638_v23 = vsel %vm326_vm0, %v1598_v36, 0.0  ;;  %v1600_v21 = vand.u32 2147483647, %v1584_v32 }
 0x1fc   : > { %1612 = vadd.xlane.f32.xlu1 %v1611_v56  ;;  %1609 = vadd.xlane.f32.xlu0 %v1608_v59  ;;  %v1594_v7 = vand.u32 2147483647, %v1578_v54  ;;  %v1647_v12 = vsel %vm326_vm0, %v1601_v53, 0.0 }
 0x1fd   : > { %v1224_v50 = vpop.xlane.xlu1 %1223  ;;  %v1221_v47 = vpop.xlane.xlu0 %1220  ;;  %v1644_v10 = vsel %vm326_vm0, %v1600_v21, 0.0 }
 0x1fe   : > { %v3917_v57 = vsel %vm1803_vm10, %v3802_v16, %v1224_v50  ;;  %v3921_v45 = vsel %vm1803_vm10, %v3806_v27, %v1221_v47  ;;  %v1620_v16 = vsel %vm326_vm0, %v1592_v8, 0.0  ;;  %v1626_v28 = vsel %vm326_vm0, %v1594_v7, 0.0 }
 0x1ff   : > { %vm1967_vm0 = vcmask 130048  }
 0x200   : > { %1618 = vadd.xlane.f32.xlu1 %v1617_v20  ;;  %1615 = vadd.xlane.f32.xlu0 %v1614_v34 }
 0x201   : > { %v1267_v18 = vpop.xlane.xlu1 %1266  ;;  %v1264_v33 = vpop.xlane.xlu0 %1263 }
 0x202   : > { %v1822_v27 = vsel %vm1820_vm11, %v3816_v62, %v1267_v18  ;;  %v1821_v35 = vsel %vm1820_vm11, %v3820_v40, %v1264_v33 }
 0x204   : > { %1624 = vadd.xlane.f32.xlu1 %v1623_v24  ;;  %1621 = vadd.xlane.f32.xlu0 %v1620_v16 }
 0x205   : > { %v1273_v42 = vpop.xlane.xlu1 %1272  ;;  %v1270_v55 = vpop.xlane.xlu0 %1269 }
 0x206   : > { %v1824_v62 = vsel %vm1820_vm11, %v3830_v63, %v1273_v42  ;;  %v1823_v40 = vsel %vm1820_vm11, %v3834_v43, %v1270_v55 }
 0x208   : > { %1630 = vadd.xlane.f32.xlu1 %v1629_v22  ;;  %1627 = vadd.xlane.f32.xlu0 %v1626_v28 }
 0x209   : > { %v1279_v39 = vpop.xlane.xlu1 %1278  ;;  %v1276_v1 = vpop.xlane.xlu0 %1275 }
 0x20a   : > { %v1826_v63 = vsel %vm1820_vm11, %v3844_v5, %v1279_v39  ;;  %v1825_v43 = vsel %vm1820_vm11, %v3848_v0, %v1276_v1 }
 0x20c   : > { %1636 = vadd.xlane.f32.xlu1 %v1635_v49  ;;  %1633 = vadd.xlane.f32.xlu0 %v1632_v38 }
 0x20d   : > { %v1285_v9 = vpop.xlane.xlu1 %1284  ;;  %v1282_v4 = vpop.xlane.xlu0 %1281 }
 0x20e   : > { %v1828_v2 = vsel %vm1820_vm11, %v3861_v14, %v1285_v9  ;;  %v1827_v51 = vsel %vm1820_vm11, %v3865_v46, %v1282_v4 }
 0x210   : > { %1642 = vadd.xlane.f32.xlu1 %v1641_v48  ;;  %1639 = vadd.xlane.f32.xlu0 %v1638_v23 }
 0x211   : > { %v1291_v5 = vpop.xlane.xlu1 %1290  ;;  %v1288_v0 = vpop.xlane.xlu0 %1287 }
 0x212   : > { %v1830_v56 = vsel %vm1820_vm11, %v3875_v6, %v1291_v5  ;;  %v1829_v59 = vsel %vm1820_vm11, %v3879_v58, %v1288_v0 }
 0x214   : > { %1648 = vadd.xlane.f32.xlu1 %v1647_v12  ;;  %1645 = vadd.xlane.f32.xlu0 %v1644_v10 }
 0x215   : > { %v1297_v14 = vpop.xlane.xlu1 %1296  ;;  %v1294_v17 = vpop.xlane.xlu0 %1293 }
 0x216   : > { %v1832_v46 = vsel %vm1820_vm11, %v3889_v44, %v1297_v14  ;;  %v1831_v19 = vsel %vm1820_vm11, %v3893_v41, %v1294_v17 }
 0x219   : > { %v1303_v20 = vpop.xlane.xlu1 %1302  ;;  %v1300_v34 = vpop.xlane.xlu0 %1299 }
 0x21a   : > { %v1834_v50 = vsel %vm1820_vm11, %v3903_v29, %v1303_v20  ;;  %v1833_v6 = vsel %vm1820_vm11, %v3907_v37, %v1300_v34 }
 0x21d   : > { %v1309_v47 = vpop.xlane.xlu1 %1308  ;;  %v1306_v58 = vpop.xlane.xlu0 %1305 }
 0x21e   : > { %v1836_v61 = vsel %vm1820_vm11, %v3917_v57, %v1309_v47  ;;  %v1835_v8 = vsel %vm1820_vm11, %v3921_v45, %v1306_v58 }
 0x221   : > { %v1352_v44 = vpop.xlane.xlu1 %1351  ;;  %v1349_v60 = vpop.xlane.xlu0 %1348 }
 0x222   : > { %v3978_v41 = vsel %vm1837_vm12, %v1822_v27, %v1352_v44  ;;  %v3981_v54 = vsel %vm1837_vm12, %v1821_v35, %v1349_v60 }
 0x225   : > { %v1358_v29 = vpop.xlane.xlu1 %1357  ;;  %v1355_v13 = vpop.xlane.xlu0 %1354 }
 0x226   : > { %v3984_v37 = vsel %vm1837_vm12, %v1824_v62, %v1358_v29  ;;  %v3987_v31 = vsel %vm1837_vm12, %v1823_v40, %v1355_v13  ;;  %v4082_v29 = vld [vmem:[%s259_s8] ss:$0 sm:$0xff] }
 0x229   : > { %v1364_v57 = vpop.xlane.xlu1 %1363  ;;  %v1361_v18 = vpop.xlane.xlu0 %1360 }
 0x22a   : > { %v3990_v45 = vsel %vm1837_vm12, %v1826_v63, %v1364_v57  ;;  %v3993_v33 = vsel %vm1837_vm12, %v1825_v43, %v1361_v18 }
 0x22d   : > { %v1370_v24 = vpop.xlane.xlu1 %1369  ;;  %v1367_v16 = vpop.xlane.xlu0 %1366 }
 0x22e   : > { %v3996_v3 = vsel %vm1837_vm12, %v1828_v2, %v1370_v24  ;;  %v3999_v7 = vsel %vm1837_vm12, %v1827_v51, %v1367_v16  ;;  %v4086_v16 = vld [vmem:[%s262_s12] ss:$0 sm:$0xff] }
 0x231   : > { %v1376_v27 = vpop.xlane.xlu1 %1375  ;;  %v1373_v35 = vpop.xlane.xlu0 %1372 }
 0x232   : > { %v4002_v26 = vsel %vm1837_vm12, %v1830_v56, %v1376_v27  ;;  %v4005_v52 = vsel %vm1837_vm12, %v1829_v59, %v1373_v35 }
 0x235   : > { %v1382_v42 = vpop.xlane.xlu1 %1381  ;;  %v1379_v55 = vpop.xlane.xlu0 %1378 }
 0x236   : > { %v4008_v22 = vsel %vm1837_vm12, %v1832_v46, %v1382_v42  ;;  %v4011_v28 = vsel %vm1837_vm12, %v1831_v19, %v1379_v55 }
 0x239   : > { %v1388_v30 = vpop.xlane.xlu1 %1387  ;;  %v1385_v11 = vpop.xlane.xlu0 %1384 }
 0x23a   : > { %v4014_v62 = vsel %vm1837_vm12, %v1834_v50, %v1388_v30  ;;  %v4017_v40 = vsel %vm1837_vm12, %v1833_v6, %v1385_v11 }
 0x23d   : > { %v1394_v49 = vpop.xlane.xlu1 %1393  ;;  %v1391_v38 = vpop.xlane.xlu0 %1390 }
 0x23e   : > { %v4020_v39 = vsel %vm1837_vm12, %v1836_v61, %v1394_v49  ;;  %v4023_v1 = vsel %vm1837_vm12, %v1835_v8, %v1391_v38 }
 0x241   : > { %v1437_v25 = vpop.xlane.xlu1 %1436  ;;  %v1434_v36 = vpop.xlane.xlu0 %1433 }
 0x242   : > { %v1856_v44 = vsel %vm1854_vm13, %v3978_v41, %v1437_v25  ;;  %v1855_v60 = vsel %vm1854_vm13, %v3981_v54, %v1434_v36 }
 0x245   : > { %v1443_v15 = vpop.xlane.xlu1 %1442  ;;  %v1440_v32 = vpop.xlane.xlu0 %1439 }
 0x246   : > { %v1858_v42 = vsel %vm1854_vm13, %v3984_v37, %v1443_v15  ;;  %v1857_v55 = vsel %vm1854_vm13, %v3987_v31, %v1440_v32 }
 0x249   : > { %v4025_v63 = vpop.xlane.xlu1 %1448  ;;  %v4027_v43 = vpop.xlane.xlu0 %1445 }
 0x24d   : > { %v4029_v9 = vpop.xlane.xlu1 %1454  ;;  %v4031_v4 = vpop.xlane.xlu0 %1451 }
 0x251   : > { %v4033_v48 = vpop.xlane.xlu1 %1460  ;;  %v4035_v23 = vpop.xlane.xlu0 %1457 }
 0x255   : > { %v4037_v53 = vpop.xlane.xlu1 %1466  ;;  %v4039_v21 = vpop.xlane.xlu0 %1463 }
 0x259   : > { %v4041_v2 = vpop.xlane.xlu1 %1472  ;;  %v4043_v51 = vpop.xlane.xlu0 %1469 }
 0x25d   : > { %v4045_v5 = vpop.xlane.xlu1 %1478  ;;  %v4047_v0 = vpop.xlane.xlu0 %1475 }
 0x261   : > { %v1522_v12 = vpop.xlane.xlu1 %1521  ;;  %v1519_v10 = vpop.xlane.xlu0 %1518 }
 0x262   : > { %v1873_v13 = vsel %vm1871_vm14, %v1856_v44, %v1522_v12  ;;  %v1872_v57 = vsel %vm1871_vm14, %v1855_v60, %v1519_v10 }
 0x265   : > { %v1528_v56 = vpop.xlane.xlu1 %1527  ;;  %v1525_v59 = vpop.xlane.xlu0 %1524 }
 0x266   : > { %v1875_v30 = vsel %vm1871_vm14, %v1858_v42, %v1528_v56  ;;  %v1874_v11 = vsel %vm1871_vm14, %v1857_v55, %v1525_v59  ;;  %v1860_v56 = vsel %vm1854_vm13, %v3990_v45, %v4025_v63  ;;  %v1859_v59 = vsel %vm1854_vm13, %v3993_v33, %v4027_v43 }
 0x269   : > { %v1534_v14 = vpop.xlane.xlu1 %1533  ;;  %v1531_v17 = vpop.xlane.xlu0 %1530 }
 0x26a   : > { %v1877_v44 = vsel %vm1871_vm14, %v1860_v56, %v1534_v14  ;;  %v1876_v60 = vsel %vm1871_vm14, %v1859_v59, %v1531_v17 }
 0x26d   : > { %v4049_v46 = vpop.xlane.xlu1 %1539  ;;  %v4051_v19 = vpop.xlane.xlu0 %1536 }
 0x271   : > { %v4053_v20 = vpop.xlane.xlu1 %1545  ;;  %v4055_v34 = vpop.xlane.xlu0 %1542 }
 0x275   : > { %v4057_v50 = vpop.xlane.xlu1 %1551  ;;  %v4059_v6 = vpop.xlane.xlu0 %1548 }
 0x279   : > { %v4062_v47 = vpop.xlane.xlu1 %1557  ;;  %v4064_v58 = vpop.xlane.xlu0 %1554 }
 0x27d   : > { %v4067_v61 = vpop.xlane.xlu1 %1563  ;;  %v4069_v8 = vpop.xlane.xlu0 %1560 }
 0x281   : > { %v1607_v18 = vpop.xlane.xlu1 %1606  ;;  %v1604_v24 = vpop.xlane.xlu0 %1603 }
 0x282   : > { %v1890_v27 = vsel %vm1888_vm15, %v1873_v13, %v1607_v18  ;;  %v1889_v35 = vsel %vm1888_vm15, %v1872_v57, %v1604_v24 }
 0x283   : > { %v1913_v41 = vmul.f32 %v4082_v29, %v1890_v27  ;;  %v1912_v54 = vmul.f32 %v4082_v29, %v1889_v35  ;;  %v1862_v27 = vsel %vm1854_vm13, %v3996_v3, %v4029_v9  ;;  %v1861_v35 = vsel %vm1854_vm13, %v3999_v7, %v4031_v4 }
 0x285   : > { %v1936_v49 = vadd.f32 %v4086_v16, %v1913_v41  ;;  %v1935_v38 = vadd.f32 %v4086_v16, %v1912_v54  ;;  %v1613_v25 = vpop.xlane.xlu1 %1612  ;;  %v1610_v36 = vpop.xlane.xlu0 %1609  ;;  %v1879_v41 = vsel %vm1871_vm14, %v1862_v27, %v4049_v46  ;;  %v1878_v54 = vsel %vm1871_vm14, %v1861_v35, %v4051_v19 }
 0x286   : > { %v1892_v37 = vsel %vm1888_vm15, %v1875_v30, %v1613_v25  ;;  %v1891_v31 = vsel %vm1888_vm15, %v1874_v11, %v1610_v36  ;;  %v1870_v27 = vsel %vm1854_vm13, %v4020_v39, %v4045_v5  ;;  %v1869_v35 = vsel %vm1854_vm13, %v4023_v1, %v4047_v0 }
 0x287   : > { %v1952_v15 = vmax.f32 %v1936_v49, 0.0  ;;  %v1951_v32 = vmax.f32 %v1935_v38, 0.0  ;;  %v1915_v12 = vmul.f32 %v4082_v29, %v1892_v37  ;;  %v1914_v10 = vmul.f32 %v4082_v29, %v1891_v31 }
 0x288   : > { %v1864_v49 = vsel %vm1854_vm13, %v4002_v26, %v4033_v48  ;;  %v1863_v38 = vsel %vm1854_vm13, %v4005_v52, %v4035_v23 }
 0x289   : > { %1969 = vst.msk [vmem:[%s4103_s22 + $0x8] sm:$0xff] %vm1967_vm0, %v1952_v15  ;;  %1968 = vst.msk [vmem:[%s4103_s22] sm:$0xff] %vm1967_vm0, %v1951_v32  ;;  %v1938_v13 = vadd.f32 %v4086_v16, %v1915_v12  ;;  %v1937_v57 = vadd.f32 %v4086_v16, %v1914_v10  ;;  %v1619_v18 = vpop.xlane.xlu1 %1618  ;;  %v1616_v45 = vpop.xlane.xlu0 %1615  ;;  %v1881_v25 = vsel %vm1871_vm14, %v1864_v49, %v4053_v20 }
 0x28a   : > { %v1894_v63 = vsel %vm1888_vm15, %v1877_v44, %v1619_v18  ;;  %v1893_v33 = vsel %vm1888_vm15, %v1876_v60, %v1616_v45  ;;  %v1880_v36 = vsel %vm1871_vm14, %v1863_v38, %v4055_v34  ;;  %v1866_v12 = vsel %vm1854_vm13, %v4008_v22, %v4037_v53 }
 0x28b   : > { %v1954_v43 = vmax.f32 %v1938_v13, 0.0  ;;  %v1953_v14 = vmax.f32 %v1937_v57, 0.0  ;;  %v1917_v17 = vmul.f32 %v4082_v29, %v1894_v63  ;;  %v1916_v24 = vmul.f32 %v4082_v29, %v1893_v33 }
 0x28c   : > { %v1865_v10 = vsel %vm1854_vm13, %v4011_v28, %v4039_v21  ;;  %v1883_v56 = vsel %vm1871_vm14, %v1866_v12, %v4057_v50  ;;  %v1868_v18 = vsel %vm1854_vm13, %v4014_v62, %v4041_v2  ;;  %v1867_v45 = vsel %vm1854_vm13, %v4017_v40, %v4043_v51 }
 0x28d   : > { %1971 = vst.msk [vmem:[%s4103_s22 + $0x18] sm:$0xff] %vm1967_vm0, %v1954_v43  ;;  %1970 = vst.msk [vmem:[%s4103_s22 + $0x10] sm:$0xff] %vm1967_vm0, %v1953_v14  ;;  %v1940_v42 = vadd.f32 %v4086_v16, %v1917_v17  ;;  %v1939_v3 = vadd.f32 %v4086_v16, %v1916_v24  ;;  %v1625_v9 = vpop.xlane.xlu1 %1624  ;;  %v1622_v55 = vpop.xlane.xlu0 %1621  ;;  %v1882_v59 = vsel %vm1871_vm14, %v1865_v10, %v4059_v6 }
 0x28e   : > { %v1896_v7 = vsel %vm1888_vm15, %v1879_v41, %v1625_v9  ;;  %v1895_v4 = vsel %vm1888_vm15, %v1878_v54, %v1622_v55  ;;  %v1885_v63 = vsel %vm1871_vm14, %v1868_v18, %v4062_v47  ;;  %v1884_v33 = vsel %vm1871_vm14, %v1867_v45, %v4064_v58 }
 0x28f   : > { %v1956_v46 = vmax.f32 %v1940_v42, 0.0  ;;  %v1955_v30 = vmax.f32 %v1939_v3, 0.0  ;;  %v1919_v19 = vmul.f32 %v4082_v29, %v1896_v7  ;;  %v1918_v11 = vmul.f32 %v4082_v29, %v1895_v4 }
 0x290   : > { %v1887_v41 = vsel %vm1871_vm14, %v1870_v27, %v4067_v61  ;;  %v1886_v54 = vsel %vm1871_vm14, %v1869_v35, %v4069_v8 }
 0x291   : > { %1973 = vst.msk [vmem:[%s4103_s22 + $0x28] sm:$0xff] %vm1967_vm0, %v1956_v46  ;;  %1972 = vst.msk [vmem:[%s4103_s22 + $0x20] sm:$0xff] %vm1967_vm0, %v1955_v30  ;;  %v1942_v37 = vadd.f32 %v4086_v16, %v1919_v19  ;;  %v1941_v26 = vadd.f32 %v4086_v16, %v1918_v11  ;;  %v1631_v48 = vpop.xlane.xlu1 %1630  ;;  %v1628_v31 = vpop.xlane.xlu0 %1627 }
 0x292   : > { %v1898_v52 = vsel %vm1888_vm15, %v1881_v25, %v1631_v48  ;;  %v1897_v23 = vsel %vm1888_vm15, %v1880_v36, %v1628_v31 }
 0x293   : > { %v1958_v20 = vmax.f32 %v1942_v37, 0.0  ;;  %v1957_v15 = vmax.f32 %v1941_v26, 0.0  ;;  %v1921_v34 = vmul.f32 %v4082_v29, %v1898_v52  ;;  %v1920_v32 = vmul.f32 %v4082_v29, %v1897_v23 }
 0x295   : > { %1975 = vst.msk [vmem:[%s4103_s22 + $0x38] sm:$0xff] %vm1967_vm0, %v1958_v20  ;;  %1974 = vst.msk [vmem:[%s4103_s22 + $0x30] sm:$0xff] %vm1967_vm0, %v1957_v15  ;;  %v1944_v44 = vadd.f32 %v4086_v16, %v1921_v34  ;;  %v1943_v22 = vadd.f32 %v4086_v16, %v1920_v32  ;;  %v1637_v53 = vpop.xlane.xlu1 %1636  ;;  %v1634_v60 = vpop.xlane.xlu0 %1633 }
 0x296   : > { %v1900_v28 = vsel %vm1888_vm15, %v1883_v56, %v1637_v53  ;;  %v1899_v21 = vsel %vm1888_vm15, %v1882_v59, %v1634_v60 }
 0x297   : > { %v1960_v50 = vmax.f32 %v1944_v44, 0.0  ;;  %v1959_v13 = vmax.f32 %v1943_v22, 0.0  ;;  %v1923_v6 = vmul.f32 %v4082_v29, %v1900_v28  ;;  %v1922_v57 = vmul.f32 %v4082_v29, %v1899_v21 }
 0x299   : > { %1977 = vst.msk [vmem:[%s4103_s22 + $0x48] sm:$0xff] %vm1967_vm0, %v1960_v50  ;;  %1976 = vst.msk [vmem:[%s4103_s22 + $0x40] sm:$0xff] %vm1967_vm0, %v1959_v13  ;;  %v1946_v43 = vadd.f32 %v4086_v16, %v1923_v6  ;;  %v1945_v62 = vadd.f32 %v4086_v16, %v1922_v57  ;;  %v1643_v2 = vpop.xlane.xlu1 %1642  ;;  %v1640_v14 = vpop.xlane.xlu0 %1639 }
 0x29a   : > { %v1902_v40 = vsel %vm1888_vm15, %v1885_v63, %v1643_v2  ;;  %v1901_v51 = vsel %vm1888_vm15, %v1884_v33, %v1640_v14 }
 0x29b   : > { %v1962_v47 = vmax.f32 %v1946_v43, 0.0  ;;  %v1961_v17 = vmax.f32 %v1945_v62, 0.0  ;;  %v1925_v58 = vmul.f32 %v4082_v29, %v1902_v40  ;;  %v1924_v24 = vmul.f32 %v4082_v29, %v1901_v51 }
 0x29d   : > { %1979 = vst.msk [vmem:[%s4103_s22 + $0x58] sm:$0xff] %vm1967_vm0, %v1962_v47  ;;  %1978 = vst.msk [vmem:[%s4103_s22 + $0x50] sm:$0xff] %vm1967_vm0, %v1961_v17  ;;  %v1948_v42 = vadd.f32 %v4086_v16, %v1925_v58  ;;  %v1947_v39 = vadd.f32 %v4086_v16, %v1924_v24  ;;  %v1649_v5 = vpop.xlane.xlu1 %1648  ;;  %v1646_v3 = vpop.xlane.xlu0 %1645 }
 0x29e   : > { %v1904_v1 = vsel %vm1888_vm15, %v1887_v41, %v1649_v5  ;;  %v1903_v0 = vsel %vm1888_vm15, %v1886_v54, %v1646_v3 }
 0x29f   : > { %v1964_v61 = vmax.f32 %v1948_v42, 0.0  ;;  %v1963_v9 = vmax.f32 %v1947_v39, 0.0  ;;  %v1927_v8 = vmul.f32 %v4082_v29, %v1904_v1  ;;  %v1926_v55 = vmul.f32 %v4082_v29, %v1903_v0 }
 0x2a1   : > { %1981 = vst.msk [vmem:[%s4103_s22 + $0x68] sm:$0xff] %vm1967_vm0, %v1964_v61  ;;  %1980 = vst.msk [vmem:[%s4103_s22 + $0x60] sm:$0xff] %vm1967_vm0, %v1963_v9  ;;  %v1950_v7 = vadd.f32 %v4086_v16, %v1927_v8  ;;  %v1949_v4 = vadd.f32 %v4086_v16, %v1926_v55 }
 0x2a3   : > { %v1966_v46 = vmax.f32 %v1950_v7, 0.0  ;;  %v1965_v30 = vmax.f32 %v1949_v4, 0.0 }
 0x2a5   : > { %1983 = vst.msk [vmem:[%s4103_s22 + $0x78] sm:$0xff] %vm1967_vm0, %v1966_v46  ;;  %1982 = vst.msk [vmem:[%s4103_s22 + $0x70] sm:$0xff] %vm1967_vm0, %v1965_v30 }
 0x2a6 PF: > { %s14_s19 = sadd.s32 1, %s2240_s19   ;;  %s4257_s15 = smov %s2232_s17 }
 0x2a7   : > { %p11_p8 = scmp.ge.s32.totalorder %s14_s19, 10   ;;  %s4258_s16 = smov %s2236_s18 }
 0x2a8   : > { %s4259_s17 = smov %s4262_s20  ;;  %s4260_s18 = smov %s4266_s21 }
 0x2a9   :  { %13 = sbr.rel (!%p11_p8) target bundleno = 3 (0x3), region = 75 }

</bundles_post_ra>
